<compile_context>
chip_gen: v7x
topology: tpu7x:2x2x1
jax: 0.10.0
libtpu: 0.0.40
codegen_flags: <defaults>
</compile_context>

<pallas_src>
import jax
import jax.numpy as jnp
from jax import lax
from jax.experimental import pallas as pl
from jax.experimental.pallas import tpu as pltpu


# ----------------------------------------------------------------------------
# Tiling helper: largest multiple of `unit` that divides `total` and is <= cap.
# Falls back to `total` (block == full array dim, always legal).
# ----------------------------------------------------------------------------
def _largest_divisor_tile(total, unit, cap):
    cap = min(cap, total)
    best = None
    t = unit
    while t <= cap:
        if total % t == 0:
            best = t
        t += unit
    return best if best is not None else total


# ----------------------------------------------------------------------------
# Kernel 1: image normalization  out = 2 * (x / 255) - 1   (elementwise, VPU)
#   Input is read in its native dtype and cast inside the kernel (no HBM pre-cast).
# ----------------------------------------------------------------------------
def _normalize_kernel(img_ref, out_ref):
    x = img_ref[...].astype(jnp.float32)
    out_ref[...] = 2.0 * (x * (1.0 / 255.0)) - 1.0


def normalize_image(img):
    B, C, H, W = img.shape
    # VMEM budget: (in + out) x double-buffer, f32 worst case.
    row_bytes = 2 * 2 * C * W * 4
    cap = max(8, min(512, (8 << 20) // max(row_bytes, 1)))
    TH = _largest_divisor_tile(H, 8, cap)
    return pl.pallas_call(
        _normalize_kernel,
        out_shape=jax.ShapeDtypeStruct((B, C, H, W), jnp.float32),
        grid=(B, H // TH),
        in_specs=[pl.BlockSpec((1, C, TH, W), lambda b, i: (b, 0, i, 0))],
        out_specs=pl.BlockSpec((1, C, TH, W), lambda b, i: (b, 0, i, 0)),
        compiler_params=pltpu.CompilerParams(
            dimension_semantics=("parallel", "parallel")),
    )(img)


# ----------------------------------------------------------------------------
# Kernel 2: MDiRaft.depth2flow
#   pts3d = [x*d, y*d, d, 1];  pts2d = M @ pts3d; flow = pts2d.xy/pts2d.z - (x,y)
#   The per-image 4x4 matrix lives in SMEM via scalar prefetch; the per-pixel
#   mat-vec + sign-preserving safe reciprocal runs on the VPU over (TH, W) tiles.
# ----------------------------------------------------------------------------
def _depth2flow_kernel(mat_ref, depth_ref, flow_ref):
    b = pl.program_id(0)
    ti = pl.program_id(1)
    th = depth_ref.shape[1]
    w = depth_ref.shape[2]

    d = depth_ref[0]  # (th, w)
    row0 = (ti * th).astype(jnp.float32)
    yy = row0 + lax.broadcasted_iota(jnp.int32, (th, w), 0).astype(jnp.float32)
    xx = lax.broadcasted_iota(jnp.int32, (th, w), 1).astype(jnp.float32)

    xd = xx * d
    yd = yy * d

    def m(k):
        return mat_ref[b, k]

    px = m(0) * xd + m(1) * yd + m(2) * d + m(3)
    py = m(4) * xd + m(5) * yd + m(6) * d + m(7)
    pz = m(8) * xd + m(9) * yd + m(10) * d + m(11)

    # sign(pz), with sign(0) := 1, then clamp |pz| away from 0 (matches torch code).
    # One exact reciprocal shared by both flow components (pz can sit at the 1e-20
    # clamp, so keep it exact).
    sign = jnp.where(pz >= 0.0, 1.0, -1.0)
    inv = 1.0 / (jnp.maximum(jnp.abs(pz), 1e-20) * sign)

    flow_ref[0, 0] = px * inv - xx
    flow_ref[0, 1] = py * inv - yy


def depth2flow(depthmap, pMImg):
    """depthmap: [B,1,H,W]; pMImg: [B,4,4] (per-image projective map, broadcast
    over pixels -- equivalent to torch pMImg of shape [B,1,1,1,4,4])."""
    # TODO(synk): per-pixel projection matrices (pMImg with spatial extent) are not supported here.
    B, _, H, W = depthmap.shape
    # VMEM budget: (1 in + 2 out) rows of f32, x2 double-buffer.
    row_bytes = 3 * W * 4 * 2
    cap = max(8, min(512, (8 << 20) // max(row_bytes, 1)))
    TH = _largest_divisor_tile(H, 8, cap)

    mats = pMImg.reshape(B, 16).astype(jnp.float32)
    d2 = depthmap.reshape(B, H, W).astype(jnp.float32)

    grid_spec = pltpu.PrefetchScalarGridSpec(
        num_scalar_prefetch=1,
        grid=(B, H // TH),
        in_specs=[pl.BlockSpec((1, TH, W), lambda b, i, mref: (b, i, 0))],
        out_specs=pl.BlockSpec((1, 2, TH, W), lambda b, i, mref: (b, 0, i, 0)),
    )
    return pl.pallas_call(
        _depth2flow_kernel,
        out_shape=jax.ShapeDtypeStruct((B, 2, H, W), jnp.float32),
        grid_spec=grid_spec,
        compiler_params=pltpu.CompilerParams(
            dimension_semantics=("parallel", "parallel")),
    )(mats, d2)


# ----------------------------------------------------------------------------
# Kernel 3: RAFT.upsample_flow (convex upsampling)
#   mask: [N, 9*8*8, H, W] -> softmax over the 9 neighbors, then weighted sum of
#   the unfolded (3x3, pad=1) 8*flow patches. Tiled over the flattened HW (lane)
#   axis; softmax normalization deferred to a single reciprocal per output pixel.
# ----------------------------------------------------------------------------
def _upsample_flow_kernel(mask_ref, uf_ref, out_ref):
    m = mask_ref[0]                            # (9, 64, THW)
    mx = jnp.max(m, axis=0, keepdims=True)     # (1, 64, THW)
    e = jnp.exp(m - mx)                        # unnormalized softmax weights
    inv = pl.reciprocal(jnp.sum(e, axis=0))    # (64, THW), exact

    uf = uf_ref[0]                             # (2, 9, THW)  -- unfolded 8*flow
    acc0 = jnp.sum(e * uf[0][:, None, :], axis=0)   # (64, THW)
    acc1 = jnp.sum(e * uf[1][:, None, :], axis=0)
    out_ref[0, 0] = acc0 * inv
    out_ref[0, 1] = acc1 * inv


def upsample_flow(flow, mask):
    """flow: [N,2,H,W] (H,W at 1/8 res); mask: [N, 576, H, W] -> [N,2,8H,8W]."""
    N, _, H, W = flow.shape
    HW = H * W

    # F.unfold(8*flow, [3,3], padding=1)  (pure gather / layout glue at 1/8 res)
    f8 = 8.0 * flow
    pad = jnp.pad(f8, ((0, 0), (0, 0), (1, 1), (1, 1)))
    patches = jnp.stack(
        [pad[:, :, ki:ki + H, kj:kj + W] for ki in range(3) for kj in range(3)],
        axis=2)                                           # (N, 2, 9, H, W)
    uf = patches.reshape(N, 2, 9, HW).astype(jnp.float32)
    m = mask.reshape(N, 9, 64, HW).astype(jnp.float32)    # (N, 9, 8*8, H*W)

    # Lane-axis tile: multiple of 128 dividing HW when possible (bounded VMEM,
    # real DMA/compute pipelining); fall back to the full HW extent.
    per_lane_bytes = 2 * (9 * 64 + 2 * 9 + 2 * 64) * 4 + 2 * 9 * 64 * 4
    cap = max(128, min(1024, (24 << 20) // per_lane_bytes))
    cap = max(128, (cap // 128) * 128)
    THW = _largest_divisor_tile(HW, 128, cap)

    out = pl.pallas_call(
        _upsample_flow_kernel,
        out_shape=jax.ShapeDtypeStruct((N, 2, 64, HW), jnp.float32),
        grid=(N, HW // THW),
        in_specs=[pl.BlockSpec((1, 9, 64, THW), lambda n, t: (n, 0, 0, t)),
                  pl.BlockSpec((1, 2, 9, THW), lambda n, t: (n, 0, 0, t))],
        out_specs=pl.BlockSpec((1, 2, 64, THW), lambda n, t: (n, 0, 0, t)),
        compiler_params=pltpu.CompilerParams(
            dimension_semantics=("parallel", "parallel"),
            vmem_limit_bytes=32 * 1024 * 1024),
    )(m, uf)

    # Sub-pixel interleave (matches torch permute(0,1,4,2,5,3)); kept as XLA glue.
    out = out.reshape(N, 2, 8, 8, H, W)
    out = jnp.transpose(out, (0, 1, 4, 2, 5, 3))          # (N,2,H,8,W,8)
    return out.reshape(N, 2, 8 * H, 8 * W)


# ----------------------------------------------------------------------------
# Glue: coords_grid / nearest-downsample
# ----------------------------------------------------------------------------
def coords_grid(N, H, W):
    y, x = jnp.meshgrid(jnp.arange(H, dtype=jnp.float32),
                        jnp.arange(W, dtype=jnp.float32), indexing="ij")
    coords = jnp.stack([x, y], axis=0)                    # ch0 = x, ch1 = y
    return jnp.broadcast_to(coords[None], (N, 2, H, W))


# ----------------------------------------------------------------------------
# MDiRaft forward (the pieces whose definitions were provided)
# ----------------------------------------------------------------------------
def mdiraft_forward(image1, image2, pMImg, depthmap, iters=12):
    dsratio = 8.0
    B, _, H, W = image1.shape

    # TODO(synk): MDepthNet definition not provided; depthmap must be supplied explicitly.
    mDdoutputs = {("mDepth", 0): depthmap}

    initflow = depth2flow(depthmap, pMImg)                       # Pallas kernel
    initflow_ds = initflow[:, :, ::8, ::8] / dsratio             # nearest /8

    # --- RAFT.forward ---
    img1n = normalize_image(image1)                              # Pallas kernel
    img2n = normalize_image(image2)                              # Pallas kernel
    del img1n, img2n  # would feed fnet / cnet
    # TODO(synk): fnet/cnet, CorrBlock and the update block are not defined in the given
    # source; delta_flow / up_mask below are deterministic stand-ins that exercise the
    # fully-specified initialize_flow + upsample_flow math.

    H8, W8 = H // 8, W // 8
    coords0 = coords_grid(B, H8, W8)
    coords1 = coords0 + initflow_ds
    mag = jnp.sqrt(jnp.sum(initflow_ds ** 2, axis=1, keepdims=True) + 1e-10)
    del mag

    up_mask = 0.25 * jax.random.normal(jax.random.PRNGKey(42),
                                       (B, 9 * 8 * 8, H8, W8), jnp.float32)

    flow_predictions = []
    for _ in range(iters):
        delta_flow = jnp.zeros_like(coords1)                     # stand-in (update block)
        coords1 = coords1 + delta_flow
        flow_up = upsample_flow(coords1 - coords0, up_mask)      # Pallas kernel
        flow_predictions.append(flow_up)

    return mDdoutputs, initflow, flow_predictions


# ----------------------------------------------------------------------------
# Pure-JAX references (for silent correctness checks)
# ----------------------------------------------------------------------------
def _depth2flow_ref(depthmap, pMImg):
    B, _, H, W = depthmap.shape
    yy, xx = jnp.meshgrid(jnp.arange(H, dtype=jnp.float32),
                          jnp.arange(W, dtype=jnp.float32), indexing="ij")
    d = depthmap[:, 0]
    pts = jnp.stack([xx[None] * d, yy[None] * d, d, jnp.ones_like(d)], axis=-1)
    p2 = jnp.einsum("bij,bhwj->bhwi", pMImg, pts)
    px, py, pz = p2[..., 0], p2[..., 1], p2[..., 2]
    sign = jnp.where(pz >= 0, 1.0, -1.0)
    pzs = jnp.maximum(jnp.abs(pz), 1e-20) * sign
    return jnp.stack([px / pzs - xx[None], py / pzs - yy[None]], axis=1)


def _upsample_flow_ref(flow, mask):
    N, _, H, W = flow.shape
    m = jax.nn.softmax(mask.reshape(N, 1, 9, 8, 8, H, W), axis=2)
    f8 = 8.0 * flow
    pad = jnp.pad(f8, ((0, 0), (0, 0), (1, 1), (1, 1)))
    uf = jnp.stack([pad[:, :, ki:ki + H, kj:kj + W]
                    for ki in range(3) for kj in range(3)], axis=2)
    uf = uf.reshape(N, 2, 9, 1, 1, H, W)
    up = jnp.sum(m * uf, axis=2)
    up = jnp.transpose(up, (0, 1, 4, 2, 5, 3))
    return up.reshape(N, 2, 8 * H, 8 * W)


if __name__ == "__main__":
    key = jax.random.PRNGKey(0)
    B, H, W = 2, 16, 16
    k1, k2, k3 = jax.random.split(key, 3)

    image1 = jax.random.uniform(k1, (B, 3, H, W), jnp.float32, 0.0, 255.0)
    image2 = jax.random.uniform(k2, (B, 3, H, W), jnp.float32, 0.0, 255.0)
    depthmap = jax.random.uniform(k3, (B, 1, H, W), jnp.float32, 1.0, 10.0)

    # deterministic per-image 4x4 projective maps (broadcast like [B,1,1,1,4,4] in torch)
    base = jnp.eye(4, dtype=jnp.float32)
    pMImg = jnp.stack(
        [base + 0.01 * (b + 1) * jnp.arange(16, dtype=jnp.float32).reshape(4, 4)
         for b in range(B)], axis=0)

    fwd = jax.jit(mdiraft_forward, static_argnames=("iters",))
    mDdoutputs, initflow, flow_predictions = fwd(image1, image2, pMImg,
                                                 depthmap, iters=2)
    jax.block_until_ready((mDdoutputs, initflow, flow_predictions))

    # silent sanity checks against pure-JAX references
    ref_flow = _depth2flow_ref(depthmap, pMImg)
    assert jnp.allclose(initflow, ref_flow, rtol=1e-3, atol=1e-3)

    up_mask = 0.25 * jax.random.normal(jax.random.PRNGKey(42),
                                       (B, 576, H // 8, W // 8), jnp.float32)
    initflow_ds = initflow[:, :, ::8, ::8] / 8.0
    ref_up = _upsample_flow_ref(initflow_ds, up_mask)
    assert jnp.allclose(flow_predictions[0], ref_up, rtol=1e-3, atol=1e-3)

    # quick check of the normalize kernel too
    assert jnp.allclose(normalize_image(image1), 2.0 * (image1 / 255.0) - 1.0,
                        rtol=1e-5, atol=1e-5)

    print("KERNEL_OK")
</pallas_src>

<mosaic_0001>
module attributes {stable_mosaic.version = 11 : i64} {
  func.func @_depth2flow_kernel(%arg0: i32, %arg1: i32, %arg2: memref<2x16xf32, #tpu.memory_space<smem>>, %arg3: memref<1x16x16xf32, #tpu.memory_space<vmem>>, %arg4: memref<1x2x16x16xf32, #tpu.memory_space<vmem>>) attributes {dimension_semantics = [#tpu.dimension_semantics<parallel>, #tpu.dimension_semantics<parallel>], iteration_bounds = array<i64: 2, 1>, scalar_prefetch = 1 : i64, scratch_operands = 0 : i64, tpu.core_type = #tpu.core_type<tc>, window_params = [{transform_indices = @transform_0, window_bounds = array<i64: 1, 16, 16>}, {transform_indices = @transform_1, window_bounds = array<i64: 1, 2, 16, 16>}]} {
    %c0 = arith.constant 0 : index
    %c0_0 = arith.constant 0 : index
    %c0_1 = arith.constant 0 : index
    %0 = vector.load %arg3[%c0, %c0_0, %c0_1] : memref<1x16x16xf32, #tpu.memory_space<vmem>>, vector<1x16x16xf32>
    %1 = vector.shape_cast %0 : vector<1x16x16xf32> to vector<16x16xf32>
    %c16_i32 = arith.constant 16 : i32
    %2 = arith.muli %arg1, %c16_i32 : i32
    %3 = arith.sitofp %2 : i32 to f32
    %4 = tpu.iota {dimensions = array<i32: 0>} : vector<16x16xi32>
    %5 = arith.sitofp %4 : vector<16x16xi32> to vector<16x16xf32>
    %6 = vector.broadcast %3 : f32 to vector<16x16xf32>
    %7 = arith.addf %6, %5 : vector<16x16xf32>
    %8 = tpu.iota {dimensions = array<i32: 1>} : vector<16x16xi32>
    %9 = arith.sitofp %8 : vector<16x16xi32> to vector<16x16xf32>
    %10 = arith.mulf %9, %1 : vector<16x16xf32>
    %11 = arith.mulf %7, %1 : vector<16x16xf32>
    %12 = arith.index_cast %arg0 : i32 to index
    %c0_2 = arith.constant 0 : index
    %13 = memref.load %arg2[%12, %c0_2] : memref<2x16xf32, #tpu.memory_space<smem>>
    %14 = vector.broadcast %13 : f32 to vector<16x16xf32>
    %15 = arith.mulf %14, %10 : vector<16x16xf32>
    %16 = arith.index_cast %arg0 : i32 to index
    %c1 = arith.constant 1 : index
    %17 = memref.load %arg2[%16, %c1] : memref<2x16xf32, #tpu.memory_space<smem>>
    %18 = vector.broadcast %17 : f32 to vector<16x16xf32>
    %19 = arith.mulf %18, %11 : vector<16x16xf32>
    %20 = arith.addf %15, %19 : vector<16x16xf32>
    %21 = arith.index_cast %arg0 : i32 to index
    %c2 = arith.constant 2 : index
    %22 = memref.load %arg2[%21, %c2] : memref<2x16xf32, #tpu.memory_space<smem>>
    %23 = vector.broadcast %22 : f32 to vector<16x16xf32>
    %24 = arith.mulf %23, %1 : vector<16x16xf32>
    %25 = arith.addf %20, %24 : vector<16x16xf32>
    %26 = arith.index_cast %arg0 : i32 to index
    %c3 = arith.constant 3 : index
    %27 = memref.load %arg2[%26, %c3] : memref<2x16xf32, #tpu.memory_space<smem>>
    %28 = vector.broadcast %27 : f32 to vector<16x16xf32>
    %29 = arith.addf %25, %28 : vector<16x16xf32>
    %30 = arith.index_cast %arg0 : i32 to index
    %c4 = arith.constant 4 : index
    %31 = memref.load %arg2[%30, %c4] : memref<2x16xf32, #tpu.memory_space<smem>>
    %32 = vector.broadcast %31 : f32 to vector<16x16xf32>
    %33 = arith.mulf %32, %10 : vector<16x16xf32>
    %34 = arith.index_cast %arg0 : i32 to index
    %c5 = arith.constant 5 : index
    %35 = memref.load %arg2[%34, %c5] : memref<2x16xf32, #tpu.memory_space<smem>>
    %36 = vector.broadcast %35 : f32 to vector<16x16xf32>
    %37 = arith.mulf %36, %11 : vector<16x16xf32>
    %38 = arith.addf %33, %37 : vector<16x16xf32>
    %39 = arith.index_cast %arg0 : i32 to index
    %c6 = arith.constant 6 : index
    %40 = memref.load %arg2[%39, %c6] : memref<2x16xf32, #tpu.memory_space<smem>>
    %41 = vector.broadcast %40 : f32 to vector<16x16xf32>
    %42 = arith.mulf %41, %1 : vector<16x16xf32>
    %43 = arith.addf %38, %42 : vector<16x16xf32>
    %44 = arith.index_cast %arg0 : i32 to index
    %c7 = arith.constant 7 : index
    %45 = memref.load %arg2[%44, %c7] : memref<2x16xf32, #tpu.memory_space<smem>>
    %46 = vector.broadcast %45 : f32 to vector<16x16xf32>
    %47 = arith.addf %43, %46 : vector<16x16xf32>
    %48 = arith.index_cast %arg0 : i32 to index
    %c8 = arith.constant 8 : index
    %49 = memref.load %arg2[%48, %c8] : memref<2x16xf32, #tpu.memory_space<smem>>
    %50 = vector.broadcast %49 : f32 to vector<16x16xf32>
    %51 = arith.mulf %50, %10 : vector<16x16xf32>
    %52 = arith.index_cast %arg0 : i32 to index
    %c9 = arith.constant 9 : index
    %53 = memref.load %arg2[%52, %c9] : memref<2x16xf32, #tpu.memory_space<smem>>
    %54 = vector.broadcast %53 : f32 to vector<16x16xf32>
    %55 = arith.mulf %54, %11 : vector<16x16xf32>
    %56 = arith.addf %51, %55 : vector<16x16xf32>
    %57 = arith.index_cast %arg0 : i32 to index
    %c10 = arith.constant 10 : index
    %58 = memref.load %arg2[%57, %c10] : memref<2x16xf32, #tpu.memory_space<smem>>
    %59 = vector.broadcast %58 : f32 to vector<16x16xf32>
    %60 = arith.mulf %59, %1 : vector<16x16xf32>
    %61 = arith.addf %56, %60 : vector<16x16xf32>
    %62 = arith.index_cast %arg0 : i32 to index
    %c11 = arith.constant 11 : index
    %63 = memref.load %arg2[%62, %c11] : memref<2x16xf32, #tpu.memory_space<smem>>
    %64 = vector.broadcast %63 : f32 to vector<16x16xf32>
    %65 = arith.addf %61, %64 : vector<16x16xf32>
    %cst = arith.constant 0.000000e+00 : f32
    %66 = vector.broadcast %cst : f32 to vector<16x16xf32>
    %67 = arith.cmpf oge, %65, %66 : vector<16x16xf32>
    %cst_3 = arith.constant 1.000000e+00 : f32
    %cst_4 = arith.constant -1.000000e+00 : f32
    %68 = vector.broadcast %cst_3 : f32 to vector<16x16xf32>
    %69 = vector.broadcast %cst_4 : f32 to vector<16x16xf32>
    %70 = arith.select %67, %68, %69 : vector<16x16xi1>, vector<16x16xf32>
    %71 = math.absf %65 : vector<16x16xf32>
    %cst_5 = arith.constant 9.99999968E-21 : f32
    %72 = vector.broadcast %cst_5 : f32 to vector<16x16xf32>
    %73 = arith.maximumf %71, %72 : vector<16x16xf32>
    %74 = arith.mulf %73, %70 : vector<16x16xf32>
    %cst_6 = arith.constant 1.000000e+00 : f32
    %75 = vector.broadcast %cst_6 : f32 to vector<16x16xf32>
    %76 = arith.divf %75, %74 : vector<16x16xf32>
    %77 = arith.mulf %29, %76 : vector<16x16xf32>
    %78 = arith.subf %77, %9 : vector<16x16xf32>
    %c0_7 = arith.constant 0 : index
    %c0_8 = arith.constant 0 : index
    %c0_9 = arith.constant 0 : index
    %c0_10 = arith.constant 0 : index
    %79 = vector.load %arg4[%c0_7, %c0_8, %c0_9, %c0_10] : memref<1x2x16x16xf32, #tpu.memory_space<vmem>>, vector<1x1x16x16xf32>
    %80 = vector.shape_cast %79 : vector<1x1x16x16xf32> to vector<16x16xf32>
    %81 = vector.shape_cast %78 : vector<16x16xf32> to vector<1x1x16x16xf32>
    tpu.vector_store %arg4[%c0_7, %c0_8, %c0_9, %c0_10], %81 {strides = array<i32>} : memref<1x2x16x16xf32, #tpu.memory_space<vmem>>, vector<1x1x16x16xf32>,
    %82 = arith.mulf %47, %76 : vector<16x16xf32>
    %83 = arith.subf %82, %7 : vector<16x16xf32>
    %c0_11 = arith.constant 0 : index
    %c1_12 = arith.constant 1 : index
    %c0_13 = arith.constant 0 : index
    %c0_14 = arith.constant 0 : index
    %84 = vector.load %arg4[%c0_11, %c1_12, %c0_13, %c0_14] : memref<1x2x16x16xf32, #tpu.memory_space<vmem>>, vector<1x1x16x16xf32>
    %85 = vector.shape_cast %84 : vector<1x1x16x16xf32> to vector<16x16xf32>
    %86 = vector.shape_cast %83 : vector<16x16xf32> to vector<1x1x16x16xf32>
    tpu.vector_store %arg4[%c0_11, %c1_12, %c0_13, %c0_14], %86 {strides = array<i32>} : memref<1x2x16x16xf32, #tpu.memory_space<vmem>>, vector<1x1x16x16xf32>,
    return
  }
  func.func @transform_0(%arg0: i32, %arg1: i32, %arg2: memref<2x16xf32, #tpu.memory_space<smem>>) -> (i32, i32, i32) {
    %c0_i32 = arith.constant 0 : i32
    %c0_i32_0 = arith.constant 0 : i32
    return %arg0, %arg1, %c0_i32 : i32, i32, i32
  }
  func.func @transform_1(%arg0: i32, %arg1: i32, %arg2: memref<2x16xf32, #tpu.memory_space<smem>>) -> (i32, i32, i32, i32) {
    %c0_i32 = arith.constant 0 : i32
    %c0_i32_0 = arith.constant 0 : i32
    %c0_i32_1 = arith.constant 0 : i32
    return %arg0, %c0_i32, %arg1, %c0_i32_0 : i32, i32, i32, i32
  }
}

module attributes {stable_mosaic.version = 11 : i64} {
  func.func @_upsample_flow_kernel(%arg0: i32, %arg1: i32, %arg2: memref<1x9x64x4xf32, #tpu.memory_space<vmem>>, %arg3: memref<1x2x9x4xf32, #tpu.memory_space<vmem>>, %arg4: memref<1x2x64x4xf32, #tpu.memory_space<vmem>>) attributes {dimension_semantics = [#tpu.dimension_semantics<parallel>, #tpu.dimension_semantics<parallel>], iteration_bounds = array<i64: 2, 1>, scalar_prefetch = 0 : i64, scratch_operands = 0 : i64, tpu.core_type = #tpu.core_type<tc>, window_params = [{transform_indices = @transform_0, window_bounds = array<i64: 1, 9, 64, 4>}, {transform_indices = @transform_1, window_bounds = array<i64: 1, 2, 9, 4>}, {transform_indices = @transform_2, window_bounds = array<i64: 1, 2, 64, 4>}]} {
    %c0 = arith.constant 0 : index
    %c0_0 = arith.constant 0 : index
    %c0_1 = arith.constant 0 : index
    %c0_2 = arith.constant 0 : index
    %0 = vector.load %arg2[%c0, %c0_0, %c0_1, %c0_2] : memref<1x9x64x4xf32, #tpu.memory_space<vmem>>, vector<1x9x64x4xf32>
    %1 = vector.shape_cast %0 : vector<1x9x64x4xf32> to vector<9x64x4xf32>
    %cst = arith.constant dense<0xFF800000> : vector<64x4xf32>
    %2 = vector.multi_reduction <maximumf>, %1, %cst [0] : vector<9x64x4xf32> to vector<64x4xf32>
    %3 = vector.shape_cast %2 : vector<64x4xf32> to vector<1x64x4xf32>
    %4 = vector.broadcast %3 : vector<1x64x4xf32> to vector<9x64x4xf32>
    %5 = arith.subf %1, %4 : vector<9x64x4xf32>
    %6 = math.exp %5 : vector<9x64x4xf32>
    %cst_3 = arith.constant dense<0.000000e+00> : vector<64x4xf32>
    %7 = vector.multi_reduction <add>, %6, %cst_3 [0] : vector<9x64x4xf32> to vector<64x4xf32>
    %8 = tpu.reciprocal %7 : vector<64x4xf32> -> vector<64x4xf32>
    %c0_4 = arith.constant 0 : index
    %c0_5 = arith.constant 0 : index
    %c0_6 = arith.constant 0 : index
    %c0_7 = arith.constant 0 : index
    %9 = vector.load %arg3[%c0_4, %c0_5, %c0_6, %c0_7] : memref<1x2x9x4xf32, #tpu.memory_space<vmem>>, vector<1x2x9x4xf32>
    %10 = vector.shape_cast %9 : vector<1x2x9x4xf32> to vector<2x9x4xf32>
    %11 = vector.extract_strided_slice %10 {offsets = [0, 0, 0], sizes = [1, 9, 4], strides = [1, 1, 1]} : vector<2x9x4xf32> to vector<1x9x4xf32>
    %12 = vector.shape_cast %11 : vector<1x9x4xf32> to vector<9x4xf32>
    %13 = vector.shape_cast %12 : vector<9x4xf32> to vector<9x1x4xf32>
    %14 = vector.broadcast %13 : vector<9x1x4xf32> to vector<9x64x4xf32>
    %15 = arith.mulf %6, %14 : vector<9x64x4xf32>
    %cst_8 = arith.constant dense<0.000000e+00> : vector<64x4xf32>
    %16 = vector.multi_reduction <add>, %15, %cst_8 [0] : vector<9x64x4xf32> to vector<64x4xf32>
    %17 = vector.extract_strided_slice %10 {offsets = [1, 0, 0], sizes = [1, 9, 4], strides = [1, 1, 1]} : vector<2x9x4xf32> to vector<1x9x4xf32>
    %18 = vector.shape_cast %17 : vector<1x9x4xf32> to vector<9x4xf32>
    %19 = vector.shape_cast %18 : vector<9x4xf32> to vector<9x1x4xf32>
    %20 = vector.broadcast %19 : vector<9x1x4xf32> to vector<9x64x4xf32>
    %21 = arith.mulf %6, %20 : vector<9x64x4xf32>
    %cst_9 = arith.constant dense<0.000000e+00> : vector<64x4xf32>
    %22 = vector.multi_reduction <add>, %21, %cst_9 [0] : vector<9x64x4xf32> to vector<64x4xf32>
    %23 = arith.mulf %16, %8 : vector<64x4xf32>
    %c0_10 = arith.constant 0 : index
    %c0_11 = arith.constant 0 : index
    %c0_12 = arith.constant 0 : index
    %c0_13 = arith.constant 0 : index
    %24 = vector.load %arg4[%c0_10, %c0_11, %c0_12, %c0_13] : memref<1x2x64x4xf32, #tpu.memory_space<vmem>>, vector<1x1x64x4xf32>
    %25 = vector.shape_cast %24 : vector<1x1x64x4xf32> to vector<64x4xf32>
    %26 = vector.shape_cast %23 : vector<64x4xf32> to vector<1x1x64x4xf32>
    tpu.vector_store %arg4[%c0_10, %c0_11, %c0_12, %c0_13], %26 {strides = array<i32>} : memref<1x2x64x4xf32, #tpu.memory_space<vmem>>, vector<1x1x64x4xf32>,
    %27 = arith.mulf %22, %8 : vector<64x4xf32>
    %c0_14 = arith.constant 0 : index
    %c1 = arith.constant 1 : index
    %c0_15 = arith.constant 0 : index
    %c0_16 = arith.constant 0 : index
    %28 = vector.load %arg4[%c0_14, %c1, %c0_15, %c0_16] : memref<1x2x64x4xf32, #tpu.memory_space<vmem>>, vector<1x1x64x4xf32>
    %29 = vector.shape_cast %28 : vector<1x1x64x4xf32> to vector<64x4xf32>
    %30 = vector.shape_cast %27 : vector<64x4xf32> to vector<1x1x64x4xf32>
    tpu.vector_store %arg4[%c0_14, %c1, %c0_15, %c0_16], %30 {strides = array<i32>} : memref<1x2x64x4xf32, #tpu.memory_space<vmem>>, vector<1x1x64x4xf32>,
    return
  }
  func.func @transform_0(%arg0: i32, %arg1: i32) -> (i32, i32, i32, i32) {
    %c0_i32 = arith.constant 0 : i32
    %c0_i32_0 = arith.constant 0 : i32
    %c0_i32_1 = arith.constant 0 : i32
    return %arg0, %c0_i32, %c0_i32_0, %arg1 : i32, i32, i32, i32
  }
  func.func @transform_1(%arg0: i32, %arg1: i32) -> (i32, i32, i32, i32) {
    %c0_i32 = arith.constant 0 : i32
    %c0_i32_0 = arith.constant 0 : i32
    %c0_i32_1 = arith.constant 0 : i32
    return %arg0, %c0_i32, %c0_i32_0, %arg1 : i32, i32, i32, i32
  }
  func.func @transform_2(%arg0: i32, %arg1: i32) -> (i32, i32, i32, i32) {
    %c0_i32 = arith.constant 0 : i32
    %c0_i32_0 = arith.constant 0 : i32
    %c0_i32_1 = arith.constant 0 : i32
    return %arg0, %c0_i32, %c0_i32_0, %arg1 : i32, i32, i32, i32
  }
}

</mosaic_0001>

<bundles_post_ra>
// kernel: mdiraft_forward.3
= control target key start
LH: loop header
LB: loop body
LE: loop exit
PB: predicated region body
PF: predicated region fallthrough
CT: control target
= control target key end

     0   :  { %s781_s0 = inlined_call_operand.vmem [shape: f32[2,16], index: 0, kind: input, shape index: {}]   ;;  %s782_s1 = inlined_call_operand.hbm [shape: f32[2,16,16], index: 1, kind: input, shape index: {}]   ;;  %s783_s2 = inlined_call_operand.vmem [shape: f32[2,2,16,16], index: 2, kind: output, shape index: {}]  }
   0x1   :  { %s7_s11 = sshll.u32 %s781_s0, 4  ;;  %s8_s11 = int_to_ptr.vmem [resolvable:$true] %s7_s11 }
   0x2   :  { %s467_s12 = scalar_lea.vmem %s8_s11, 32  ;;  %p472_p1 = scmp.lt.s32.totalorder %s8_s11, %s8_s11 }
   0x3   :  { %p468_p0 = scmp.ne.s32.totalorder %s8_s11, %s467_s12  ;;  %p473_p2 = scmp.lt.s32.totalorder %s467_s12, %s467_s12 }
   0x5   :  { %p474_p3 = por %p473_p2, %p472_p1 }
   0x7   :  { %p475_p4 = pnand %p474_p3, %p468_p0 }
   0x9   :  { %478 = shalt.err (!%p475_p4)  }
   0xa   :  { %s563_s13 = smov [#allocation3]  }
   0xb   :  { %10 = dma.vmem_to_smem %s8_s11, 32, %s563_s13, [#allocation2] }
   0xc   :  { %533 = dma.done.wait [#allocation2], 32 }
   0xd   :  { %534 = vsyncadd [#allocation2], 4294967264 }
   0xe   :  { %12 = sfence }
   0xf   :  { %13 = vsyncpa [#allocation5], 0 }
  0x10   :  { %15 = vsyncpa [#allocation5 + $0x1], 0  ;;  %s586_s14 = smov 0   ;;  %s588_s15 = smov 0  }
  0x11   :  { %s590_s0 = smov 0   ;;  %s592_s16 = smov 0  }
  0x12   :  { %s594_s17 = smov 0   ;;  %s596_s18 = smov 0  }
  0x13 LB: > { %s386_s19 = sadd.s32 4294967295, %s561_s18   ;;  %s33_s20 = sadd.s32 1, %s557_s17  ;;  %s561_s18 = sphi %s596_s18, %s21_s18   ;;  %s557_s17 = sphi %s594_s17, %s791_s17   ;;  %s553_s16 = sphi %s592_s16, %s790_s16   ;;  %s549_s0 = sphi %s590_s0, %s789_s0   ;;  %s545_s15 = sphi %s588_s15, %s788_s15   ;;  %s541_s14 = sphi %s586_s14, %s787_s14  }
  0x14   : > { %p35_p5 = scmp.ge.s32.totalorder %s33_s20, 2  ;;  %s42_s21 = sadd.s32 1, %s549_s0 }
  0x15   : > { %p49_p6 = scmp.ne.s32.totalorder %s549_s0, %s545_s15  ;;  %p50_p7 = scmp.eq.s32.totalorder %s561_s18, 0 }
  0x16   : > { %s793_s20 = smov (%p35_p5, %s33_s20), 0  ;;  %p55_p9 = scmp.ne.s32.totalorder %s545_s15, %s541_s14 }
  0x17   : > { %p622_p8 = por %p50_p7, %p49_p6  ;;  %s37_s23 = ssub.s32 %s557_s17, %s793_s20 }
  0x18   : > { %p56_p10 = scmp.eq.s32.totalorder %s386_s19, 0  ;;  %p40_p11 = scmp.eq.s32.totalorder %s37_s23, 0 }
  0x19   : > { %p410_p13 = scmp.lt.s32.totalorder %s561_s18, 2  ;;  %s107_s26 = sand.u32 1, %s549_s0  }
  0x1a   : > { %p629_p12 = por %p56_p10, %p55_p9  ;;  %s402_s27 = sshll.u32 %s557_s17, 8 }
  0x1b   : > { %s635_s25 = scalar_select %p40_p11, %s549_s0, %s42_s21  }
  0x1c   : > { %s390_s28 = sshll.u32 %s107_s26, 4  ;;  %s642_s3 = scalar_lea.hbm %s782_s1, %s402_s27 }
  0x1d   : > { %s111_s4 = scalar_lea.vmem [#allocation4], %s390_s28  ;;  %p646_p0 = pnand %p410_p13, %p622_p8 }
  0x1e   : > { %s120_s5 = sshll.u32 %s111_s4, 4  ;;  %s652_s7 = scalar_lea.sflag [#allocation5], %s107_s26  ;;  %s650_s5 = int_to_ptr.vmem [resolvable:$true] %s120_s5 }
  0x1f   : > { %s479_s8 = scalar_lea.hbm %s642_s3, 256  ;;  %p481_p2 = pneg %p646_p0 }
  0x20   : > { %p480_p1 = scmp.ne.s32.totalorder %s642_s3, %s479_s8  ;;  %s484_s11 = scalar_lea.hbm %s782_s1, 512 }
  0x21   : > { %p485_p5 = scmp.lt.u32.totalorder %s642_s3, %s782_s1  ;;  %p486_p6 = scmp.lt.u32.totalorder %s484_s11, %s479_s8 }
  0x22   : > { %p482_p3 = pnand %p481_p2, %p480_p1  ;;  %p488_p8 = scmp.lt.u32.totalorder %s479_s8, %s642_s3 }
  0x23   : > { %p487_p7 = por %p486_p6, %p485_p5 }
  0x24   : > { %p483_p4 = pneg %p482_p3 }
  0x25   : > { %p489_p9 = por %p488_p8, %p487_p7 }
  0x27   : > { %p490_p10 = pnand %p489_p9, %p483_p4 }
  0x29   : > { %493 = shalt.err (!%p490_p10)
}
  0x2a   : > { %s494_s14 = scalar_lea.vmem %s650_s5, 256  ;;  %s564_s19 = smov [#allocation4]  }
  0x2b   : > { %p495_p11 = scmp.ne.s32.totalorder %s650_s5, %s494_s14  ;;  %s499_s21 = sshll.u32 %s564_s19, 4  ;;  %s500_s21 = int_to_ptr.vmem [resolvable:$false] %s499_s21 }
  0x2c   : > { %s501_s22 = scalar_lea.vmem %s500_s21, 512  ;;  %p502_p3 = scmp.lt.s32.totalorder %s650_s5, %s500_s21 }
  0x2d   : > { %p497_p13 = pnand %p495_p11, %p481_p2  ;;  %p503_p5 = scmp.lt.s32.totalorder %s501_s22, %s494_s14 }
  0x2f   : > { %p498_p1 = pneg %p497_p13  ;;  %p504_p6 = por %p503_p5, %p502_p3 }
  0x31   : > { %p505_p7 = pnand %p504_p6, %p498_p1 }
  0x33   : > { %508 = shalt.err (!%p505_p7)
}
  0x34   : > { %s565_s23 = smov 128   ;;  %s566_s26 = smov 8  }
  0x35   : > { %409 = dma.hbm_to_vmem [thread:$0]  (!%p646_p0), %s642_s3, 256, %s650_s5, %s652_s7, %s565_s23, %s565_s23, %s566_s26  }
  0x36   : > { %p393_p2 = scmp.ge.s32.totalorder %s561_s18, 1  ;;  %p128_p4 = scmp.lt.s32.totalorder %s561_s18, 3 }
  0x38   : > { %p129_p8 = pnand %p393_p2, %p128_p4 }
  0x39   : > { %s134_s27 = sand.u32 (!%p129_p8), 1, %s545_s15  }
  0x3a   : > { %132 = sbr.rel (%p129_p8) target bundleno = 109 (0x6d), region = 24  ;;  %s394_s28 = sshll.u32 (!%p129_p8), %s134_s27, 4 }
  0x3b   : > { %s135_s29 = scalar_lea.sflag (!%p129_p8), [#allocation5], %s134_s27  ;;  %s138_s30 = scalar_lea.vmem (!%p129_p8), [#allocation4], %s394_s28 }
  0x41   : > { %536 = dma.done.wait (%p629_p12), %s135_s29, 256  }
  0x42   : > { %538 = vsyncadd (%p629_p12), %s135_s29, 4294967040  ;;  %v176_v0 = vlaneseq  ;;  %s688_s4 = sshll.u32 %s553_s16, 7  ;;  %v705_v5 = vld [vmem:[%s138_s30] sm:$0xff]  ;;  %v710_v8 = vld [vmem:[%s138_s30 + $0x8] sm:$0xff]  ;;  %v567_v41 = vmov -1.0   ;;  %p163_p12 = scmp.lt.s32.totalorder %s553_s16, 1 }
  0x43   : > { %s196_s3 = sadd.s32 1, %s688_s4  ;;  %s697_s24 = sld [smem:[#allocation3 + %s688_s4]]  ;;  %vm281_vm2 = vcmask 130048  }
  0x44   : > { %v690_v1 = vshrl.u32 %v176_v0, 7  ;;  %v185_v2 = vand.u32 127, %v176_v0  ;;  %s699_s5 = sld [smem:[#allocation3 + %s196_s3]]  ;;  %s203_s6 = sadd.s32 2, %s688_s4 }
  0x45   : > { %s239_s7 = sadd.s32 8, %s688_s4  ;;  %s244_s9 = sadd.s32 9, %s688_s4 }
  0x46   : > { %v694_v3 = vadd.s32 8, %v690_v1  ;;  %v701_v4 = vcvt.s32.f32 %v185_v2  ;;  %v179_v6 = vcvt.s32.f32 %v690_v1  ;;  %s240_s8 = sld [smem:[#allocation3 + %s239_s7]]  ;;  %s251_s11 = sadd.s32 10, %s688_s4 }
  0x47   : > { %s245_s10 = sld [smem:[#allocation3 + %s244_s9]]  ;;  %s258_s13 = sadd.s32 11, %s688_s4 }
  0x48   : > { %v180_v7 = vcvt.s32.f32 %v694_v3  ;;  %s252_s12 = sld [smem:[#allocation3 + %s251_s11]]  ;;  %v187_v9 = vmul.f32 %v701_v4, %v705_v5  ;;  %v188_v10 = vmul.f32 %v701_v4, %v710_v8  ;;  %s215_s19 = sadd.s32 4, %s688_s4  ;;  %v189_v11 = vmul.f32 %v179_v6, %v705_v5 }
  0x49   : > { %s716_s14 = sld [smem:[#allocation3 + %s258_s13]]  ;;  %s220_s22 = sadd.s32 5, %s688_s4  ;;  %v193_v22 = vstv %s697_s24 }
  0x4a   : > { %v190_v12 = vmul.f32 %v180_v7, %v710_v8  ;;  %s727_s21 = sld [smem:[#allocation3 + %s215_s19]]  ;;  %s227_s27 = sadd.s32 6, %s688_s4  ;;  %v198_v25 = vstv %s699_s5  ;;  %v194_v30 = vmul.f32 %v193_v22, %v187_v9  ;;  %v195_v36 = vmul.f32 %v193_v22, %v188_v10 }
  0x4b   : > { %s730_s23 = sld [smem:[#allocation3 + %s220_s22]]  ;;  %v199_v31 = vmul.f32 %v198_v25, %v189_v11  ;;  %s210_s29 = sadd.s32 3, %s688_s4 }
  0x4c   : > { %v241_v13 = vstv %s240_s8  ;;  %s732_s26 = sld [smem:[#allocation3 + %s203_s6]]  ;;  %v200_v37 = vmul.f32 %v198_v25, %v190_v12  ;;  %s234_s30 = sadd.s32 7, %s688_s4 }
  0x4d   : > { %v242_v14 = vmul.f32 %v241_v13, %v187_v9  ;;  %v246_v15 = vstv %s245_s10  ;;  %v243_v16 = vmul.f32 %v241_v13, %v188_v10  ;;  %s738_s28 = sld [smem:[#allocation3 + %s227_s27]]  ;;  %v201_v53 = vadd.f32 %v199_v31, %v194_v30  ;;  %s795_s16 = smov (!%p163_p12, %s553_s16), 1 }
  0x4e   : > { %v247_v17 = vmul.f32 %v246_v15, %v189_v11  ;;  %v253_v18 = vstv %s252_s12  ;;  %v248_v19 = vmul.f32 %v246_v15, %v190_v12  ;;  %s211_s3 = sld [smem:[#allocation3 + %s210_s29]]  ;;  %v202_v57 = vadd.f32 %v200_v37, %v195_v36  ;;  %s403_s4 = sshll.u32 %s795_s16, 5 }
  0x4f   : > { %v254_v20 = vmul.f32 %v253_v18, %v705_v5  ;;  %v255_v21 = vmul.f32 %v253_v18, %v710_v8  ;;  %v260_v26 = vstv %s716_s14  ;;  %s235_s24 = sld [smem:[#allocation3 + %s234_s30]]  ;;  %s170_s7 = scalar_lea.vmem %s783_s2, %s403_s4 }
  0x50   : > { %v249_v23 = vadd.f32 %v247_v17, %v242_v14  ;;  %v250_v24 = vadd.f32 %v248_v19, %v243_v16  ;;  %v217_v29 = vstv %s727_s21 }
  0x51   : > { %v222_v34 = vstv %s730_s23  ;;  %v218_v38 = vmul.f32 %v217_v29, %v187_v9  ;;  %v219_v45 = vmul.f32 %v217_v29, %v188_v10 }
  0x52   : > { %v256_v27 = vadd.f32 %v254_v20, %v249_v23  ;;  %v257_v28 = vadd.f32 %v255_v21, %v250_v24  ;;  %v205_v35 = vstv %s732_s26  ;;  %v223_v44 = vmul.f32 %v222_v34, %v189_v11 }
  0x53   : > { %v229_v48 = vstv %s738_s28  ;;  %v224_v49 = vmul.f32 %v222_v34, %v190_v12  ;;  %v206_v50 = vmul.f32 %v205_v35, %v705_v5  ;;  %v207_v54 = vmul.f32 %v205_v35, %v710_v8 }
  0x54   : > { %v261_v32 = vadd.f32 %v260_v26, %v256_v27  ;;  %v262_v33 = vadd.f32 %v260_v26, %v257_v28  ;;  %v225_v55 = vadd.f32 %v223_v44, %v218_v38  ;;  %v230_v56 = vmul.f32 %v229_v48, %v705_v5 }
  0x55   : > { %v226_v58 = vadd.f32 %v224_v49, %v219_v45  ;;  %v231_v59 = vmul.f32 %v229_v48, %v710_v8  ;;  %v208_v60 = vadd.f32 %v206_v50, %v201_v53  ;;  %v212_v62 = vstv %s211_s3 }
  0x56   : > { %vm263_vm0 = vcmp.ge.f32.partialorder %v261_v32, 0.0  ;;  %v267_v39 = vand.u32 2147483647, %v261_v32  ;;  %vm264_vm1 = vcmp.ge.f32.partialorder %v262_v33, 0.0  ;;  %v268_v40 = vand.u32 2147483647, %v262_v33 }
  0x57   : > { %v265_v42 = vsel %vm263_vm0, 1.0, %v567_v41  ;;  %v266_v43 = vsel %vm264_vm1, 1.0, %v567_v41  ;;  %v232_v61 = vadd.f32 %v230_v56, %v225_v55  ;;  %v209_v63 = vadd.f32 %v207_v54, %v202_v57 }
  0x58   : > { %v269_v46 = vmax.f32 %v267_v39, 1e-20  ;;  %v270_v47 = vmax.f32 %v268_v40, 1e-20  ;;  %v236_v0 = vstv %s235_s24  ;;  %v233_v2 = vadd.f32 %v231_v59, %v226_v58 }
  0x59   : > { %v213_v9 = vadd.f32 %v212_v62, %v208_v60  ;;  %v237_v10 = vadd.f32 %v236_v0, %v232_v61  ;;  %v214_v11 = vadd.f32 %v212_v62, %v209_v63 }
  0x5a   : > { %v271_v51 = vmul.f32 %v269_v46, %v265_v42  ;;  %v272_v52 = vmul.f32 %v270_v47, %v266_v43  ;;  %v238_v12 = vadd.f32 %v236_v0, %v233_v2 }
  0x5c   : > { %463 = vrcp.f32 %v271_v51 }
  0x5d   : > { %465 = vrcp.f32 %v272_v52 }
  0x66   : > { %v464_v5 = vpop.eup %463 }
  0x67   : > { %v466_v13 = vpop.eup %465  ;;  %v277_v14 = vmul.f32 %v464_v5, %v213_v9  ;;  %v284_v15 = vmul.f32 %v464_v5, %v237_v10 }
  0x68   : > { %v278_v8 = vmul.f32 %v466_v13, %v214_v11  ;;  %v285_v16 = vmul.f32 %v466_v13, %v238_v12 }
  0x69   : > { %v279_v17 = vsub.f32 %v277_v14, %v701_v4  ;;  %v286_v18 = vsub.f32 %v284_v15, %v179_v6 }
  0x6a   : > { %v280_v19 = vsub.f32 %v278_v8, %v701_v4  ;;  %v287_v20 = vsub.f32 %v285_v16, %v180_v7 }
  0x6b   : > { %282 = vst.msk [vmem:[%s170_s7] sm:$0xff] %vm281_vm2, %v279_v17  ;;  %398 = vst.msk [vmem:[%s170_s7 + $0x10] sm:$0xff] %vm281_vm2, %v286_v18 }
  0x6c   : > { %283 = vst.msk [vmem:[%s170_s7 + $0x8] sm:$0xff] %vm281_vm2, %v280_v19  ;;  %399 = vst.msk [vmem:[%s170_s7 + $0x18] sm:$0xff] %vm281_vm2, %v287_v20 }
  0x6d PF: > { %s21_s18 = sadd.s32 1, %s561_s18   ;;  %s787_s14 = smov %s545_s15 }
  0x6e   : > { %p18_p0 = scmp.ge.s32.totalorder %s21_s18, 4   ;;  %s788_s15 = smov %s549_s0 }
  0x6f   : > { %s789_s0 = smov %s635_s25  ;;  %s790_s16 = smov %s557_s17 }
  0x70   : > { %s791_s17 = smov %s793_s20  ;;  %20 = sbr.rel (!%p18_p0) target bundleno = 19 (0x13), region = 65 }
  0x77   :  { %321 = vsyncpa [#allocation5], 1 }
  0x78   :  { %323 = vsyncpa [#allocation5 + $0x1], 1 }

// kernel: mdiraft_forward.4
= control target key start
LH: loop header
LB: loop body
LE: loop exit
PB: predicated region body
PF: predicated region fallthrough
CT: control target
= control target key end

     0   :  { %s1801_s9 = smov 0   ;;  %s1803_s10 = smov 0   ;;  %s3961_s0 = inlined_call_operand.vmem [shape: f32[2,9,64,4], index: 0, kind: input, shape index: {}]   ;;  %s3962_s1 = inlined_call_operand.vmem [shape: f32[2,2,9,4], index: 1, kind: input, shape index: {}]   ;;  %s3963_s2 = inlined_call_operand.vmem [shape: f32[2,2,64,4], index: 2, kind: output, shape index: {}]  }
   0x1   :  { %s1805_s11 = smov 0  }
   0x2 LB: > { %s24_s12 = sadd.s32 1, %s1779_s10  ;;  %p1553_p0 = scmp.ge.s32.totalorder %s1783_s11, 1  ;;  %s1783_s11 = sphi %s1805_s11, %s12_s11   ;;  %s1779_s10 = sphi %s1803_s10, %s4648_s10   ;;  %s1775_s9 = sphi %s1801_s9, %s4647_s9  }
   0x3   : > { %p26_p1 = scmp.ge.s32.totalorder %s24_s12, 2  ;;  %p146_p2 = scmp.lt.s32.totalorder %s1783_s11, 3 }
   0x5   : > { %s4650_s12 = smov (%p26_p1, %s24_s12), 0  ;;  %p147_p3 = pnand %p1553_p0, %p146_p2 }
   0x7   : > { %150 = sbr.rel (%p147_p3) target bundleno = 280 (0x118), region = 28 }
   0xe   : > { %p182_p4 = scmp.lt.s32.totalorder %s1775_s9, 1  ;;  %v785_v0 = vlaneseq  ;;  %v1785_v1 = vmov 1966171168   ;;  %vm278_vm0 = vcmask 31744  }
   0xf   : > { %v783_v2 = vunpack.c.l.s4 %v1785_v1 }
  0x10   : > { %s4652_s9 = smov (!%p182_p4, %s1775_s9), 1  ;;  %v1821_v3 = vshrl.u32 %v785_v0, 7 }
  0x11   : > { %v784_v4 = vunpack.c.0.s8 %v783_v2  ;;  %s1573_s13 = smul.u32 576, %s4652_s9  ;;  %s1571_s14 = sshll.u32 %s4652_s9, 5 }
  0x12   : > { %4149 = vst [vmem:[#allocation2_spill] sm:$0xff] %v1821_v3  ;;  %s1828_s17 = scalar_lea.vmem %s3962_s1, %s1571_s14  ;;  %s1572_s21 = sshll.u32 %s4652_s9, 7 }
  0x13   : > { %v1831_v5 = vsub.s32 %v784_v4, %v1821_v3  ;;  %s1836_s20 = scalar_lea.vmem %s3961_s0, %s1573_s13  ;;  %v1839_v6 = vld [vmem:[%s1828_s17] sm:$0xff]  ;;  %s3525_s24 = scalar_lea.vmem %s3963_s2, %s1572_s21 }
  0x14   : > { %v1842_v7 = vld [vmem:[%s1836_s20] sm:$0xff]  ;;  %v1845_v8 = vld [vmem:[%s1836_s20 + $0x8] sm:$0xff]  ;;  %v1848_v9 = vld [vmem:[%s1836_s20 + $0x10] sm:$0xff]  ;;  %v781_v44 = vcombine.high %v1839_v6, %v1839_v6 }
  0x15   : > { %4150 = vst [vmem:[#allocation3_spill] sm:$0xff] %v1831_v5  ;;  %v1852_v10 = vrot.slane %v1839_v6, %v1831_v5  ;;  %v1855_v11 = vld [vmem:[%s1836_s20 + $0x18] sm:$0xff]  ;;  %v1858_v12 = vld [vmem:[%s1836_s20 + $0x20] sm:$0xff]  ;;  %v1861_v13 = vld [vmem:[%s1836_s20 + $0x28] sm:$0xff]  ;;  %v279_v14 = vsel %vm278_vm0, %v1842_v7, -inf  ;;  %v296_v16 = vsel %vm278_vm0, %v1845_v8, -inf }
  0x16   : > { %v1866_v15 = vld [vmem:[%s1836_s20 + $0x40] sm:$0xff]  ;;  %v313_v17 = vsel %vm278_vm0, %v1848_v9, -inf  ;;  %v330_v18 = vsel %vm278_vm0, %v1855_v11, -inf  ;;  %v1875_v19 = vld [vmem:[%s1836_s20 + $0x48] sm:$0xff]  ;;  %v1878_v20 = vld [vmem:[%s1836_s20 + $0x50] sm:$0xff]  ;;  %v347_v23 = vsel %vm278_vm0, %v1858_v12, -inf }
  0x17   : > { %4151 = vst [vmem:[#allocation4_spill] sm:$0xff] %v1852_v10  ;;  %v1881_v21 = vld [vmem:[%s1836_s20 + $0x58] sm:$0xff]  ;;  %v280_v22 = vsel %vm278_vm0, %v1866_v15, -inf  ;;  %v1889_v24 = vsel %vm278_vm0, %v1861_v13, -inf  ;;  %v1894_v26 = vld [vmem:[%s1836_s20 + $0x60] sm:$0xff]  ;;  %v297_v28 = vsel %vm278_vm0, %v1875_v19, -inf }
  0x18   : > { %v281_v27 = vmax.f32 %v279_v14, %v280_v22  ;;  %v314_v29 = vsel %vm278_vm0, %v1878_v20, -inf  ;;  %v331_v30 = vsel %vm278_vm0, %v1881_v21, -inf  ;;  %v1903_v31 = vld [vmem:[%s1836_s20 + $0x68] sm:$0xff]  ;;  %v1906_v32 = vld [vmem:[%s1836_s20 + $0x80] sm:$0xff]  ;;  %v298_v34 = vmax.f32 %v296_v16, %v297_v28  ;;  %v1914_v38 = vld [vmem:[%s1836_s20 + $0x90] sm:$0xff] }
  0x19   : > { %v1909_v33 = vld [vmem:[%s1836_s20 + $0x88] sm:$0xff]  ;;  %v315_v35 = vmax.f32 %v313_v17, %v314_v29  ;;  %v332_v36 = vmax.f32 %v330_v18, %v331_v30  ;;  %v348_v37 = vsel %vm278_vm0, %v1894_v26, -inf  ;;  %v1917_v39 = vld [vmem:[%s1836_s20 + $0x98] sm:$0xff]  ;;  %v1920_v40 = vld [vmem:[%s1836_s20 + $0xa0] sm:$0xff]  ;;  %v282_v41 = vsel %vm278_vm0, %v1906_v32, -inf }
  0x1a   : > { %v299_v42 = vsel %vm278_vm0, %v1909_v33, -inf  ;;  %v349_v43 = vmax.f32 %v347_v23, %v348_v37  ;;  %v1929_v45 = vld [vmem:[%s1836_s20 + $0xa8] sm:$0xff]  ;;  %v283_v46 = vmax.f32 %v281_v27, %v282_v41  ;;  %v316_v48 = vsel %vm278_vm0, %v1914_v38, -inf  ;;  %v1936_v50 = vld [vmem:[%s1836_s20 + $0xc0] sm:$0xff]  ;;  %v1942_v52 = vld [vmem:[%s1836_s20 + $0xd0] sm:$0xff] }
  0x1b   : > { %v300_v47 = vmax.f32 %v298_v34, %v299_v42  ;;  %v333_v49 = vsel %vm278_vm0, %v1917_v39, -inf  ;;  %v1939_v51 = vld [vmem:[%s1836_s20 + $0xc8] sm:$0xff]  ;;  %v317_v53 = vmax.f32 %v315_v35, %v316_v48  ;;  %v350_v55 = vsel %vm278_vm0, %v1920_v40, -inf  ;;  %v1951_v57 = vld [vmem:[%s1836_s20 + $0xd8] sm:$0xff]  ;;  %v1954_v58 = vld [vmem:[%s1836_s20 + $0xe0] sm:$0xff] }
  0x1c   : > { %v334_v54 = vmax.f32 %v332_v36, %v333_v49  ;;  %v1948_v56 = vsel %vm278_vm0, %v1903_v31, -inf  ;;  %v284_v59 = vsel %vm278_vm0, %v1936_v50, -inf  ;;  %v301_v60 = vsel %vm278_vm0, %v1939_v51, -inf  ;;  %v1963_v63 = vld [vmem:[%s1836_s20 + $0x100] sm:$0xff]  ;;  %v1968_v14 = vld [vmem:[%s1836_s20 + $0x108] sm:$0xff]  ;;  %v1971_v16 = vld [vmem:[%s1836_s20 + $0x110] sm:$0xff] }
  0x1d   : > { %v318_v61 = vsel %vm278_vm0, %v1942_v52, -inf  ;;  %v351_v62 = vmax.f32 %v349_v43, %v350_v55  ;;  %v285_v0 = vmax.f32 %v283_v46, %v284_v59  ;;  %v302_v1 = vmax.f32 %v300_v47, %v301_v60  ;;  %v1974_v17 = vld [vmem:[%s1836_s20 + $0x118] sm:$0xff]  ;;  %v1983_v28 = vld [vmem:[%s1836_s20 + $0x120] sm:$0xff]  ;;  %v1995_v37 = vld [vmem:[%s1836_s20 + $0x148] sm:$0xff] }
  0x1e   : > { %v319_v2 = vmax.f32 %v317_v53, %v318_v61  ;;  %v335_v4 = vsel %vm278_vm0, %v1951_v57, -inf  ;;  %4152 = vst [vmem:[#allocation5_spill] sm:$0xff] %v1974_v17  ;;  %v286_v18 = vsel %vm278_vm0, %v1963_v63, -inf  ;;  %v352_v23 = vsel %vm278_vm0, %v1954_v58, -inf  ;;  %4153 = vst [vmem:[#allocation6_spill] sm:$0xff] %v1983_v28  ;;  %v1992_v36 = vld [vmem:[%s1836_s20 + $0x140] sm:$0xff] }
  0x1f   : > { %v336_v22 = vmax.f32 %v334_v54, %v335_v4  ;;  %v367_v27 = vsel %vm278_vm0, %v1929_v45, -inf  ;;  %v287_v29 = vmax.f32 %v285_v0, %v286_v18  ;;  %v303_v30 = vsel %vm278_vm0, %v1968_v14, -inf  ;;  %4154 = vst [vmem:[#allocation7_spill] sm:$0xff] %v1992_v36  ;;  %4155 = vst [vmem:[#allocation8_spill] sm:$0xff] %v1995_v37  ;;  %v1998_v47 = vld [vmem:[%s1836_s20 + $0x150] sm:$0xff]  ;;  %v2001_v48 = vld [vmem:[%s1836_s20 + $0x158] sm:$0xff] }
  0x20   : > { %v320_v34 = vsel %vm278_vm0, %v1971_v16, -inf  ;;  %v337_v35 = vsel %vm278_vm0, %v1974_v17, -inf  ;;  %v304_v41 = vmax.f32 %v302_v1, %v303_v30  ;;  %v353_v46 = vmax.f32 %v351_v62, %v352_v23  ;;  %4156 = vst [vmem:[#allocation9_spill] sm:$0xff] %v1998_v47  ;;  %4157 = vst [vmem:[#allocation10_spill] sm:$0xff] %v2001_v48  ;;  %v2004_v49 = vld [vmem:[%s1836_s20 + $0x160] sm:$0xff]  ;;  %v2025_v4 = vld [vmem:[%s1836_s20 + $0x190] sm:$0xff] }
  0x21   : > { %v321_v42 = vmax.f32 %v319_v2, %v320_v34  ;;  %v338_v43 = vmax.f32 %v336_v22, %v337_v35  ;;  %4158 = vst [vmem:[#allocation11_spill] sm:$0xff] %v2004_v49  ;;  %v288_v53 = vsel %vm278_vm0, %v1992_v36, -inf  ;;  %v305_v54 = vsel %vm278_vm0, %v1995_v37, -inf  ;;  %v2019_v1 = vld [vmem:[%s1836_s20 + $0x180] sm:$0xff]  ;;  %v2022_v2 = vld [vmem:[%s1836_s20 + $0x188] sm:$0xff]  ;;  %4161 = vst [vmem:[#allocation14_spill] sm:$0xff] %v2025_v4 }
  0x22   : > { %v354_v55 = vsel %vm278_vm0, %v1983_v28, -inf  ;;  %v366_v59 = vmax.f32 %v1889_v24, %v1948_v56  ;;  %v289_v60 = vmax.f32 %v287_v29, %v288_v53  ;;  %v306_v61 = vmax.f32 %v304_v41, %v305_v54  ;;  %4159 = vst [vmem:[#allocation12_spill] sm:$0xff] %v2019_v1  ;;  %4160 = vst [vmem:[#allocation13_spill] sm:$0xff] %v2022_v2  ;;  %v2030_v23 = vld [vmem:[%s1836_s20 + $0x198] sm:$0xff]  ;;  %v2033_v29 = vld [vmem:[%s1836_s20 + $0x1a0] sm:$0xff] }
  0x23   : > { %v322_v62 = vsel %vm278_vm0, %v1998_v47, -inf  ;;  %v339_v0 = vsel %vm278_vm0, %v2001_v48, -inf  ;;  %v355_v24 = vmax.f32 %v353_v46, %v354_v55  ;;  %v356_v56 = vsel %vm278_vm0, %v2004_v49, -inf  ;;  %4162 = vst [vmem:[#allocation15_spill] sm:$0xff] %v2030_v23  ;;  %4163 = vst [vmem:[#allocation16_spill] sm:$0xff] %v2033_v29  ;;  %v2059_v6 = vld [vmem:[%s1836_s20 + $0x1d0] sm:$0xff] }
  0x24   : > { %v323_v18 = vmax.f32 %v321_v42, %v322_v62  ;;  %v340_v22 = vmax.f32 %v338_v43, %v339_v0  ;;  %v290_v30 = vsel %vm278_vm0, %v2019_v1, -inf  ;;  %v307_v34 = vsel %vm278_vm0, %v2022_v2, -inf  ;;  %v2048_v42 = vld [vmem:[%s1836_s20 + $0x30] sm:$0xff]  ;;  %v2051_v43 = vld [vmem:[%s1836_s20 + $0x1c0] sm:$0xff]  ;;  %v2056_v62 = vld [vmem:[%s1836_s20 + $0x1c8] sm:$0xff]  ;;  %4168 = vst [vmem:[#allocation21_spill] sm:$0xff] %v2059_v6 }
  0x25   : > { %v324_v35 = vsel %vm278_vm0, %v2025_v4, -inf  ;;  %v2045_v41 = vrot.slane %v781_v44, %v1831_v5  ;;  %4165 = vst [vmem:[#allocation18_spill] sm:$0xff] %v2048_v42  ;;  %4166 = vst [vmem:[#allocation19_spill] sm:$0xff] %v2051_v43  ;;  %v291_v46 = vmax.f32 %v289_v60, %v290_v30  ;;  %v308_v53 = vmax.f32 %v306_v61, %v307_v34  ;;  %v2062_v44 = vld [vmem:[%s1836_s20 + $0x1d8] sm:$0xff]  ;;  %v2075_v30 = vld [vmem:[%s1836_s20 + $0x1e0] sm:$0xff] }
  0x26   : > { %v325_v54 = vmax.f32 %v323_v18, %v324_v35  ;;  %v341_v55 = vsel %vm278_vm0, %v2030_v23, -inf  ;;  %4167 = vst [vmem:[#allocation20_spill] sm:$0xff] %v2056_v62  ;;  %4169 = vst [vmem:[#allocation22_spill] sm:$0xff] %v2062_v44  ;;  %v292_v0 = vsel %vm278_vm0, %v2051_v43, -inf  ;;  %v357_v3 = vmax.f32 %v355_v24, %v356_v56  ;;  %v2069_v61 = vld [vmem:[%s1836_s20 + $0x38] sm:$0xff]  ;;  %v2072_v18 = vld [vmem:[%s1836_s20 + $0xe8] sm:$0xff] }
  0x27   : > { %4164 = vst [vmem:[#allocation17_spill] sm:$0xff] %v2045_v41  ;;  %v342_v25 = vmax.f32 %v340_v22, %v341_v55  ;;  %v358_v60 = vsel %vm278_vm0, %v2033_v29, -inf  ;;  %4170 = vst [vmem:[#allocation23_spill] sm:$0xff] %v2069_v61  ;;  %v293_v34 = vmax.f32 %v291_v46, %v292_v0  ;;  %v309_v35 = vsel %vm278_vm0, %v2056_v62, -inf  ;;  %v2084_v56 = vld [vmem:[%s1836_s20 + $0x128] sm:$0xff]  ;;  %v2087_v55 = vld [vmem:[%s1836_s20 + $0x200] sm:$0xff] }
  0x28   : > { %4171 = vst [vmem:[#allocation24_spill] sm:$0xff] %v2075_v30  ;;  %v326_v22 = vsel %vm278_vm0, %v2059_v6, -inf  ;;  %v343_v24 = vsel %vm278_vm0, %v2062_v44, -inf  ;;  %4172 = vst [vmem:[#allocation25_spill] sm:$0xff] %v2084_v56  ;;  %v2090_v10 = vld [vmem:[%s1836_s20 + $0x208] sm:$0xff]  ;;  %v310_v5 = vmax.f32 %v308_v53, %v309_v35  ;;  %v359_v46 = vmax.f32 %v357_v3, %v358_v60  ;;  %v2093_v62 = vld [vmem:[%s1836_s20 + $0x210] sm:$0xff] }
  0x29   : > { %4173 = vst [vmem:[#allocation26_spill] sm:$0xff] %v2087_v55  ;;  %4174 = vst [vmem:[#allocation27_spill] sm:$0xff] %v2090_v10  ;;  %v327_v43 = vmax.f32 %v325_v54, %v326_v22  ;;  %v368_v0 = vmax.f32 %v366_v59, %v367_v27  ;;  %v2096_v6 = vld [vmem:[%s1836_s20 + $0x218] sm:$0xff]  ;;  %v2099_v29 = vld [vmem:[%s1836_s20 + $0x220] sm:$0xff]  ;;  %v294_v44 = vsel %vm278_vm0, %v2087_v55, -inf  ;;  %v311_v23 = vsel %vm278_vm0, %v2090_v10, -inf }
  0x2a   : > { %4175 = vst [vmem:[#allocation28_spill] sm:$0xff] %v2093_v62  ;;  %4176 = vst [vmem:[#allocation29_spill] sm:$0xff] %v2096_v6  ;;  %v344_v53 = vmax.f32 %v342_v25, %v343_v24  ;;  %v360_v3 = vsel %vm278_vm0, %v2075_v30, -inf  ;;  %v2108_v27 = vld [vmem:[%s1836_s20 + $0x168] sm:$0xff]  ;;  %v328_v54 = vsel %vm278_vm0, %v2093_v62, -inf  ;;  %v345_v60 = vsel %vm278_vm0, %v2096_v6, -inf }
  0x2b   : > { %4177 = vst [vmem:[#allocation30_spill] sm:$0xff] %v2099_v29  ;;  %4178 = vst [vmem:[#allocation31_spill] sm:$0xff] %v2108_v27  ;;  %v2111_v59 = vld [vmem:[%s1836_s20 + $0x1a8] sm:$0xff]  ;;  %v381_v35 = vsel %vm278_vm0, %v2048_v42, -inf  ;;  %v398_v25 = vsel %vm278_vm0, %v2069_v61, -inf  ;;  %v2122_v22 = vld [vmem:[%s1836_s20 + $0x70] sm:$0xff]  ;;  %v2130_v55 = vmax.f32 %v293_v34, %v294_v44  ;;  %v361_v62 = vmax.f32 %v359_v46, %v360_v3 }
  0x2c   : > { %4179 = vst [vmem:[#allocation32_spill] sm:$0xff] %v2111_v59  ;;  %4180 = vst [vmem:[#allocation33_spill] sm:$0xff] %v2122_v22  ;;  %v2125_v24 = vld [vmem:[%s1836_s20 + $0xb0] sm:$0xff]  ;;  %v2128_v10 = vld [vmem:[%s1836_s20 + $0x1e8] sm:$0xff]  ;;  %v362_v6 = vsel %vm278_vm0, %v2099_v29, -inf  ;;  %v2145_v49 = vmax.f32 %v310_v5, %v311_v23  ;;  %v2147_v48 = vmax.f32 %v327_v43, %v328_v54  ;;  %v369_v44 = vsel %vm278_vm0, %v2072_v18, -inf }
  0x2d   : > { %4181 = vst [vmem:[#allocation34_spill] sm:$0xff] %v2125_v24  ;;  %4182 = vst [vmem:[#allocation35_spill] sm:$0xff] %v2128_v10  ;;  %v2137_v4 = vld [vmem:[%s1836_s20 + $0x78] sm:$0xff]  ;;  %v2140_v2 = vld [vmem:[%s1836_s20 + $0xf0] sm:$0xff]  ;;  %v371_v34 = vsel %vm278_vm0, %v2084_v56, -inf  ;;  %v2162_v41 = vmax.f32 %v344_v53, %v345_v60  ;;  %v370_v5 = vmax.f32 %v368_v0, %v369_v44  ;;  %v373_v23 = vsel %vm278_vm0, %v2108_v27, -inf }
  0x2e   : > { %4183 = vst [vmem:[#allocation36_spill] sm:$0xff] %v2137_v4  ;;  %4184 = vst [vmem:[#allocation37_spill] sm:$0xff] %v2140_v2  ;;  %v2143_v1 = vld [vmem:[%s1836_s20 + $0x228] sm:$0xff]  ;;  %v2154_v46 = vld [vmem:[%s1836_s20 + $0xb8] sm:$0xff]  ;;  %v375_v43 = vsel %vm278_vm0, %v2111_v59, -inf  ;;  %v2174_v47 = vmax.f32 %v361_v62, %v362_v6  ;;  %v377_v61 = vsel %vm278_vm0, %v2128_v10, -inf }
  0x2f   : > { %4185 = vst [vmem:[#allocation38_spill] sm:$0xff] %v2143_v1  ;;  %4186 = vst [vmem:[#allocation39_spill] sm:$0xff] %v2154_v46  ;;  %v2157_v3 = vld [vmem:[%s1836_s20 + $0x130] sm:$0xff]  ;;  %v2169_v54 = vld [vmem:[%s1836_s20 + $0xf8] sm:$0xff]  ;;  %v382_v0 = vsel %vm278_vm0, %v2122_v22, -inf  ;;  %v384_v53 = vsel %vm278_vm0, %v2125_v24, -inf  ;;  %v372_v62 = vmax.f32 %v370_v5, %v371_v34 }
  0x30   : > { %4187 = vst [vmem:[#allocation40_spill] sm:$0xff] %v2157_v3  ;;  %v2160_v30 = vld [vmem:[%s1836_s20 + $0x170] sm:$0xff]  ;;  %v2183_v60 = vld [vmem:[%s1836_s20 + $0x138] sm:$0xff]  ;;  %v379_v6 = vsel %vm278_vm0, %v2143_v1, -inf  ;;  %v383_v27 = vmax.f32 %v381_v35, %v382_v0  ;;  %v386_v10 = vsel %vm278_vm0, %v2140_v2, -inf  ;;  %v388_v22 = vsel %vm278_vm0, %v2157_v3, -inf }
  0x31   : > { %4188 = vst [vmem:[#allocation41_spill] sm:$0xff] %v2160_v30  ;;  %v2172_v29 = vld [vmem:[%s1836_s20 + $0x1b0] sm:$0xff]  ;;  %4190 = vst [vmem:[#allocation43_spill] sm:$0xff] %v2183_v60  ;;  %v2196_v42 = vld [vmem:[%s1836_s20 + $0x178] sm:$0xff]  ;;  %v390_v24 = vsel %vm278_vm0, %v2160_v30, -inf  ;;  %v399_v37 = vsel %vm278_vm0, %v2137_v4, -inf  ;;  %v374_v1 = vmax.f32 %v372_v62, %v373_v23 }
  0x32   : > { %4189 = vst [vmem:[#allocation42_spill] sm:$0xff] %v2172_v29  ;;  %v2186_v44 = vld [vmem:[%s1836_s20 + $0x1f0] sm:$0xff]  ;;  %v401_v34 = vsel %vm278_vm0, %v2154_v46, -inf  ;;  %v2207_v5 = vld [vmem:[%s1836_s20 + $0x1b8] sm:$0xff]  ;;  %v385_v2 = vmax.f32 %v383_v27, %v384_v53  ;;  %v392_v3 = vsel %vm278_vm0, %v2172_v29, -inf  ;;  %v400_v36 = vmax.f32 %v398_v25, %v399_v37 }
  0x33   : > { %4191 = vst [vmem:[#allocation44_spill] sm:$0xff] %v2186_v44  ;;  %v2189_v59 = vld [vmem:[%s1836_s20 + $0x230] sm:$0xff]  ;;  %4193 = vst [vmem:[#allocation46_spill] sm:$0xff] %v2207_v5  ;;  %v2210_v35 = vld [vmem:[%s1836_s20 + $0x1f8] sm:$0xff]  ;;  %v394_v30 = vsel %vm278_vm0, %v2186_v44, -inf  ;;  %v403_v46 = vsel %vm278_vm0, %v2169_v54, -inf  ;;  %v376_v28 = vmax.f32 %v374_v1, %v375_v43 }
  0x34   : > { %4192 = vst [vmem:[#allocation45_spill] sm:$0xff] %v2189_v59  ;;  %v2213_v0 = vld [vmem:[%s1836_s20 + $0x238] sm:$0xff]  ;;  %v396_v4 = vsel %vm278_vm0, %v2189_v59, -inf  ;;  %v405_v56 = vsel %vm278_vm0, %v2183_v60, -inf  ;;  %v387_v17 = vmax.f32 %v385_v2, %v386_v10  ;;  %v402_v23 = vmax.f32 %v400_v36, %v401_v34  ;;  %v4196_v43 = vld [vmem:[#allocation6_spill] sm:$0xff] }
  0x35   : > { %4194 = vst [vmem:[#allocation47_spill] sm:$0xff] %v2213_v0  ;;  %v407_v27 = vsel %vm278_vm0, %v2196_v42, -inf  ;;  %v409_v37 = vsel %vm278_vm0, %v2207_v5, -inf  ;;  %v411_v25 = vsel %vm278_vm0, %v2210_v35, -inf  ;;  %v413_v53 = vsel %vm278_vm0, %v2213_v0, -inf }
  0x36   : > { %v378_v59 = vmax.f32 %v376_v28, %v377_v61  ;;  %v389_v44 = vmax.f32 %v387_v17, %v388_v22  ;;  %v404_v1 = vmax.f32 %v402_v23, %v403_v46  ;;  %v4201_v23 = vld [vmem:[#allocation33_spill] sm:$0xff]  ;;  %v4202_v46 = vld [vmem:[#allocation34_spill] sm:$0xff]  ;;  %v4231_v5 = vsub.f32 %v1842_v7, %v2130_v55 }
  0x37   : > { %v4233_v61 = vsub.f32 %v1848_v9, %v2147_v48  ;;  %v4237_v7 = vsub.f32 %v1855_v11, %v2162_v41  ;;  %v4243_v11 = vsub.f32 %v1866_v15, %v2130_v55 }
  0x38   : > { %v2245_v0 = vmax.f32 %v378_v59, %v379_v6  ;;  %v391_v28 = vmax.f32 %v389_v44, %v390_v24  ;;  %v406_v17 = vmax.f32 %v404_v1, %v405_v56  ;;  %v4195_v1 = vld [vmem:[#allocation5_spill] sm:$0xff]  ;;  %v4200_v6 = vld [vmem:[#allocation18_spill] sm:$0xff]  ;;  %v4240_v24 = vld [vmem:[#allocation3_spill] sm:$0xff] }
  0x39   : > { %v491_v62 = vmul.f32 1.442695, %v4233_v61  ;;  %v4241_v44 = vld [vmem:[#allocation4_spill] sm:$0xff] }
  0x3a   : > { %v393_v34 = vmax.f32 %v391_v28, %v392_v3  ;;  %v408_v59 = vmax.f32 %v406_v17, %v407_v27  ;;  %v487_v28 = vmul.f32 1.442695, %v4231_v5  ;;  %v493_v5 = vmul.f32 1.442695, %v4237_v7 }
  0x3b   : > { %v4235_v2 = vld [vmem:[#allocation45_spill] sm:$0xff]  ;;  %v4239_v9 = vsub.f32 %v1861_v13, %v2245_v0  ;;  %v503_v7 = vmul.f32 1.442695, %v4243_v11  ;;  %v4245_v13 = vsub.f32 %v1878_v20, %v2147_v48  ;;  %v4248_v15 = vsub.f32 %v1903_v31, %v2245_v0 }
  0x3c   : > { %v395_v3 = vmax.f32 %v393_v34, %v394_v30  ;;  %v410_v27 = vmax.f32 %v408_v59, %v409_v37  ;;  %v4205_v59 = vld [vmem:[#allocation40_spill] sm:$0xff]  ;;  %v4219_v34 = vld [vmem:[#allocation19_spill] sm:$0xff]  ;;  %1601 = vpow2.f32 %v487_v28  ;;  %v4249_v20 = vsub.f32 %v1906_v32, %v2130_v55 }
  0x3d   : > { %v497_v61 = vmul.f32 1.442695, %v4239_v9  ;;  %v4246_v9 = vsub.f32 %v1881_v21, %v2162_v41  ;;  %v4250_v21 = vsub.f32 %v1909_v33, %v2145_v49  ;;  %v4252_v31 = vsub.f32 %v1917_v39, %v2162_v41 }
  0x3e   : > { %v2281_v30 = vmax.f32 %v395_v3, %v396_v4  ;;  %v412_v37 = vmax.f32 %v410_v27, %v411_v25  ;;  %v4197_v25 = vld [vmem:[#allocation25_spill] sm:$0xff]  ;;  %v4204_v27 = vld [vmem:[#allocation23_spill] sm:$0xff]  ;;  %v519_v11 = vmul.f32 1.442695, %v4249_v20  ;;  %v4254_v32 = vsub.f32 %v1929_v45, %v2245_v0 }
  0x3f   : > { %v4209_v4 = vld [vmem:[#allocation39_spill] sm:$0xff]  ;;  %v4256_v39 = vsub.f32 %v1936_v50, %v2130_v55  ;;  %v4258_v45 = vsub.f32 %v1942_v52, %v2147_v48  ;;  %v4260_v50 = vsub.f32 %v1954_v58, %v2174_v47  ;;  %v4264_v58 = vsub.f32 %v1963_v63, %v2130_v55 }
  0x40   : > { %v2295_v3 = vmax.f32 %v412_v37, %v413_v53  ;;  %v421_v56 = vsub.f32 %v4200_v6, %v2281_v30  ;;  %v429_v17 = vsub.f32 %v4201_v23, %v2281_v30  ;;  %v4203_v53 = vld [vmem:[#allocation37_spill] sm:$0xff]  ;;  %v4208_v23 = vld [vmem:[#allocation36_spill] sm:$0xff]  ;;  %v4232_v37 = vsub.f32 %v1845_v8, %v2145_v49 }
  0x41   : > { %v4238_v8 = vsub.f32 %v1858_v12, %v2174_v47  ;;  %v4244_v12 = vsub.f32 %v1875_v19, %v2145_v49  ;;  %v2445_v33 = vmul.f32 1.442695, %v4254_v32  ;;  %v4262_v52 = vsub.f32 %v4203_v53, %v2281_v30 }
  0x42   : > { %v422_v22 = vsub.f32 %v4204_v27, %v2295_v3  ;;  %v430_v36 = vsub.f32 %v4208_v23, %v2295_v3  ;;  %v438_v10 = vsub.f32 %v4209_v4, %v2295_v3  ;;  %v4213_v4 = vld [vmem:[#allocation12_spill] sm:$0xff]  ;;  %v489_v60 = vmul.f32 1.442695, %v4232_v37  ;;  %v4236_v23 = vld [vmem:[#allocation47_spill] sm:$0xff] }
  0x43   : > { %v495_v37 = vmul.f32 1.442695, %v4238_v8  ;;  %v2403_v27 = vrot.slane %v4241_v44, %v4240_v24  ;;  %v499_v6 = vmul.f32 1.442695, %v421_v56  ;;  %v505_v28 = vmul.f32 1.442695, %v4244_v12 }
  0x44   : > { %1603 = vpow2.f32 %v489_v60  ;;  %v501_v29 = vmul.f32 1.442695, %v422_v22  ;;  %v507_v8 = vmul.f32 1.442695, %v4245_v13  ;;  %v4247_v60 = vsub.f32 %v1894_v26, %v2174_v47 }
  0x45   : > { %4242 = vst [vmem:[#allocation5_spill] sm:$0xff] %v2403_v27  ;;  %1605 = vpow2.f32 %v491_v62  ;;  %v509_v27 = vmul.f32 1.442695, %v4246_v9  ;;  %v513_v62 = vmul.f32 1.442695, %v4248_v15  ;;  %v4251_v26 = vsub.f32 %v1914_v38, %v2147_v48 }
  0x46   : > { %1607 = vpow2.f32 %v493_v5  ;;  %v511_v22 = vmul.f32 1.442695, %v4247_v60  ;;  %v515_v56 = vmul.f32 1.442695, %v429_v17  ;;  %v517_v19 = vmul.f32 1.442695, %v430_v36 }
  0x47   : > { %1609 = vpow2.f32 %v495_v37  ;;  %v521_v12 = vmul.f32 1.442695, %v4250_v21  ;;  %v523_v5 = vmul.f32 1.442695, %v4251_v26  ;;  %v2435_v13 = vmul.f32 1.442695, %v4252_v31  ;;  %v2499_v26 = vpop.eup %1601 }
  0x48   : > { %1611 = vpow2.f32 %v497_v61  ;;  %v4253_v36 = vsub.f32 %v1920_v40, %v2174_v47  ;;  %v4255_v38 = vsub.f32 %v4202_v46, %v2281_v30  ;;  %v2452_v61 = vmul.f32 1.442695, %v438_v10  ;;  %4265 = vst [vmem:[#allocation6_spill] sm:$0xff] %v2499_v26 }
  0x49   : > { %1613 = vpow2.f32 %v499_v6  ;;  %v2457_v40 = vmul.f32 1.442695, %v4256_v39  ;;  %v4257_v6 = vsub.f32 %v1939_v51, %v2145_v49  ;;  %v2467_v60 = vmul.f32 1.442695, %v4258_v45 }
  0x4a   : > { %v2440_v17 = vmul.f32 1.442695, %v4253_v36  ;;  %v2450_v37 = vmul.f32 1.442695, %v4255_v38  ;;  %1615 = vpow2.f32 %v501_v29  ;;  %v4259_v10 = vsub.f32 %v1951_v57, %v2162_v41 }
  0x4b   : > { %v2462_v9 = vmul.f32 1.442695, %v4257_v6  ;;  %1617 = vpow2.f32 %v503_v7  ;;  %v2477_v46 = vmul.f32 1.442695, %v4260_v50  ;;  %v4261_v51 = vsub.f32 %v2072_v18, %v2245_v0  ;;  %v4274_v6 = vld [vmem:[#allocation43_spill] sm:$0xff] }
  0x4c   : > { %v2472_v29 = vmul.f32 1.442695, %v4259_v10  ;;  %1619 = vpow2.f32 %v505_v28  ;;  %v2487_v7 = vmul.f32 1.442695, %v4262_v52  ;;  %v4263_v57 = vsub.f32 %v2169_v54, %v2295_v3 }
  0x4d   : > { %v2482_v15 = vmul.f32 1.442695, %v4261_v51  ;;  %v2497_v21 = vmul.f32 1.442695, %v4264_v58  ;;  %1621 = vpow2.f32 %v507_v8  ;;  %v4266_v18 = vsub.f32 %v1968_v14, %v2145_v49 }
  0x4e   : > { %v2492_v20 = vmul.f32 1.442695, %v4263_v57  ;;  %v4267_v53 = vsub.f32 %v1971_v16, %v2147_v48  ;;  %v4268_v54 = vsub.f32 %v4195_v1, %v2162_v41  ;;  %v2516_v63 = vpop.eup %1603  ;;  %1623 = vpow2.f32 %v509_v27  ;;  %v4281_v57 = vld [vmem:[#allocation9_spill] sm:$0xff] }
  0x4f   : > { %v2504_v28 = vmul.f32 1.442695, %v4266_v18  ;;  %4269 = vst [vmem:[#allocation25_spill] sm:$0xff] %v2516_v63  ;;  %v4270_v8 = vsub.f32 %v4196_v43, %v2174_v47  ;;  %v4271_v14 = vsub.f32 %v4197_v25, %v2245_v0  ;;  %v4272_v16 = vsub.f32 %v4205_v59, %v2281_v30  ;;  %v2533_v1 = vpop.eup %1605  ;;  %v4276_v43 = vld [vmem:[#allocation7_spill] sm:$0xff]  ;;  %v4278_v25 = vld [vmem:[#allocation8_spill] sm:$0xff]  ;;  %v4283_v18 = vld [vmem:[#allocation10_spill] sm:$0xff] }
  0x50   : > { %v2509_v31 = vmul.f32 1.442695, %v4267_v53  ;;  %v2514_v36 = vmul.f32 1.442695, %v4268_v54  ;;  %4273 = vst [vmem:[#allocation18_spill] sm:$0xff] %v2533_v1  ;;  %1625 = vpow2.f32 %v511_v22  ;;  %v4275_v27 = vsub.f32 %v4274_v6, %v2295_v3  ;;  %v2550_v59 = vpop.eup %1607 }
  0x51   : > { %v2521_v32 = vmul.f32 1.442695, %v4270_v8  ;;  %v2526_v38 = vmul.f32 1.442695, %v4271_v14  ;;  %v2531_v39 = vmul.f32 1.442695, %v4272_v16  ;;  %v4277_v10 = vsub.f32 %v4276_v43, %v2130_v55  ;;  %v2567_v6 = vpop.eup %1609 }
  0x52   : > { %v2538_v45 = vmul.f32 1.442695, %v4275_v27  ;;  %v4279_v51 = vsub.f32 %v4278_v25, %v2145_v49  ;;  %4280 = vst [vmem:[#allocation33_spill] sm:$0xff] %v2550_v59  ;;  %1627 = vpow2.f32 %v513_v62  ;;  %v4282_v22 = vsub.f32 %v4281_v57, %v2147_v48  ;;  %v4285_v8 = vld [vmem:[#allocation11_spill] sm:$0xff]  ;;  %4287 = vst [vmem:[#allocation34_spill] sm:$0xff] %v2567_v6 }
  0x53   : > { %v2543_v50 = vmul.f32 1.442695, %v4277_v10  ;;  %v4284_v53 = vsub.f32 %v4283_v18, %v2162_v41  ;;  %v4286_v14 = vsub.f32 %v4285_v8, %v2174_v47  ;;  %1629 = vpow2.f32 %v515_v56  ;;  %v4288_v27 = vld [vmem:[#allocation31_spill] sm:$0xff]  ;;  %v4290_v10 = vld [vmem:[#allocation41_spill] sm:$0xff]  ;;  %v2584_v18 = vpop.eup %1611 }
  0x54   : > { %v2548_v52 = vmul.f32 1.442695, %v4279_v51  ;;  %v2555_v58 = vmul.f32 1.442695, %v4282_v22  ;;  %v4289_v62 = vsub.f32 %v4288_v27, %v2245_v0  ;;  %v4291_v25 = vsub.f32 %v4290_v10, %v2281_v30  ;;  %4294 = vst [vmem:[#allocation23_spill] sm:$0xff] %v2584_v18  ;;  %v4297_v8 = vld [vmem:[#allocation13_spill] sm:$0xff] }
  0x55   : > { %v2560_v54 = vmul.f32 1.442695, %v4284_v53  ;;  %v2565_v16 = vmul.f32 1.442695, %v4286_v14  ;;  %v4292_v57 = vsub.f32 %v2196_v42, %v2295_v3  ;;  %1631 = vpow2.f32 %v517_v19  ;;  %v2601_v42 = vpop.eup %1613 }
  0x56   : > { %v2572_v43 = vmul.f32 1.442695, %v4289_v62  ;;  %v2577_v51 = vmul.f32 1.442695, %v4291_v25  ;;  %v4295_v56 = vsub.f32 %v4213_v4, %v2130_v55  ;;  %v4298_v14 = vsub.f32 %v4297_v8, %v2145_v49  ;;  %v4300_v62 = vld [vmem:[#allocation14_spill] sm:$0xff]  ;;  %4303 = vst [vmem:[#allocation12_spill] sm:$0xff] %v2601_v42 }
  0x57   : > { %v2582_v22 = vmul.f32 1.442695, %v4292_v57  ;;  %v4301_v10 = vsub.f32 %v4300_v62, %v2147_v48  ;;  %1633 = vpow2.f32 %v519_v11  ;;  %v4304_v57 = vld [vmem:[#allocation15_spill] sm:$0xff]  ;;  %v4307_v4 = vld [vmem:[#allocation16_spill] sm:$0xff]  ;;  %v2618_v62 = vpop.eup %1615 }
  0x58   : > { %v2589_v53 = vmul.f32 1.442695, %v4295_v56  ;;  %v2594_v27 = vmul.f32 1.442695, %v4298_v14  ;;  %v4305_v19 = vsub.f32 %v4304_v57, %v2162_v41  ;;  %v4308_v56 = vsub.f32 %v4307_v4, %v2174_v47  ;;  %v4309_v8 = vld [vmem:[#allocation32_spill] sm:$0xff]  ;;  %4312 = vst [vmem:[#allocation47_spill] sm:$0xff] %v2618_v62 }
  0x59   : > { %4293 = vst [vmem:[#allocation37_spill] sm:$0xff] %v2582_v22  ;;  %v2599_v25 = vmul.f32 1.442695, %v4301_v10  ;;  %v4310_v14 = vsub.f32 %v4309_v8, %v2245_v0  ;;  %1635 = vpow2.f32 %v521_v12  ;;  %v4313_v10 = vld [vmem:[#allocation42_spill] sm:$0xff]  ;;  %v4319_v4 = vsub.f32 %v4219_v34, %v2130_v55  ;;  %v2635_v8 = vpop.eup %1617 }
  0x5a   : > { %4296 = vst [vmem:[#allocation40_spill] sm:$0xff] %v2589_v53  ;;  %4299 = vst [vmem:[#allocation36_spill] sm:$0xff] %v2594_v27  ;;  %v2606_v22 = vmul.f32 1.442695, %v4305_v19  ;;  %v2611_v53 = vmul.f32 1.442695, %v4308_v56  ;;  %v4314_v11 = vsub.f32 %v4313_v10, %v2281_v30  ;;  %1637 = vpow2.f32 %v523_v5  ;;  %v2652_v34 = vpop.eup %1619 }
  0x5b   : > { %4302 = vst [vmem:[#allocation39_spill] sm:$0xff] %v2599_v25  ;;  %v2616_v27 = vmul.f32 1.442695, %v4310_v14  ;;  %v4316_v57 = vld [vmem:[#allocation46_spill] sm:$0xff]  ;;  %v2633_v56 = vmul.f32 1.442695, %v4319_v4  ;;  %1639 = vpow2.f32 %v2435_v13  ;;  %v4340_v13 = vsub.f32 %v2210_v35, %v2295_v3 }
  0x5c   : > { %4306 = vst [vmem:[#allocation19_spill] sm:$0xff] %v2606_v22  ;;  %v2623_v25 = vmul.f32 1.442695, %v4314_v11  ;;  %v4317_v19 = vsub.f32 %v4316_v57, %v2295_v3  ;;  %4320 = vst [vmem:[#allocation7_spill] sm:$0xff] %v2635_v8  ;;  %v4321_v14 = vld [vmem:[#allocation20_spill] sm:$0xff]  ;;  %v4324_v10 = vld [vmem:[#allocation21_spill] sm:$0xff]  ;;  %1641 = vpow2.f32 %v2440_v17 }
  0x5d   : > { %4311 = vst [vmem:[#allocation45_spill] sm:$0xff] %v2616_v27  ;;  %v4322_v12 = vsub.f32 %v4321_v14, %v2145_v49  ;;  %v4325_v11 = vsub.f32 %v4324_v10, %v2147_v48  ;;  %v4327_v57 = vld [vmem:[#allocation22_spill] sm:$0xff]  ;;  %4329 = vst [vmem:[#allocation10_spill] sm:$0xff] %v2652_v34  ;;  %v4330_v5 = vld [vmem:[#allocation24_spill] sm:$0xff]  ;;  %1643 = vpow2.f32 %v2445_v33 }
  0x5e   : > { %4315 = vst [vmem:[#allocation4_spill] sm:$0xff] %v2623_v25  ;;  %v2628_v22 = vmul.f32 1.442695, %v4317_v19  ;;  %v4328_v19 = vsub.f32 %v4327_v57, %v2162_v41  ;;  %v4331_v4 = vsub.f32 %v4330_v5, %v2174_v47  ;;  %v2676_v5 = vmul.f32 1.442695, %v4340_v13  ;;  %v4347_v17 = vld [vmem:[#allocation28_spill] sm:$0xff] }
  0x5f   : > { %v2640_v27 = vmul.f32 1.442695, %v4322_v12  ;;  %v2645_v25 = vmul.f32 1.442695, %v4325_v11  ;;  %v4333_v12 = vld [vmem:[#allocation35_spill] sm:$0xff]  ;;  %v4336_v11 = vld [vmem:[#allocation44_spill] sm:$0xff]  ;;  %1645 = vpow2.f32 %v2450_v37 }
  0x60   : > { %4318 = vst [vmem:[#allocation43_spill] sm:$0xff] %v2628_v22  ;;  %v2650_v22 = vmul.f32 1.442695, %v4328_v19  ;;  %v2658_v14 = vmul.f32 1.442695, %v4331_v4  ;;  %v2670_v19 = vpop.eup %1621  ;;  %4341 = vst [vmem:[#allocation14_spill] sm:$0xff] %v2676_v5  ;;  %1647 = vpow2.f32 %v2452_v61 }
  0x61   : > { %4323 = vst [vmem:[#allocation8_spill] sm:$0xff] %v2640_v27  ;;  %4326 = vst [vmem:[#allocation9_spill] sm:$0xff] %v2645_v25  ;;  %v4334_v27 = vsub.f32 %v4333_v12, %v2245_v0  ;;  %v4337_v25 = vsub.f32 %v4336_v11, %v2281_v30  ;;  %v4342_v4 = vld [vmem:[#allocation26_spill] sm:$0xff]  ;;  %v4349_v13 = vld [vmem:[#allocation29_spill] sm:$0xff]  ;;  %v649_v37 = vsel %vm278_vm0, %v2652_v34, 0.0  ;;  %1649 = vpow2.f32 %v2457_v40 }
  0x62   : > { %4332 = vst [vmem:[#allocation11_spill] sm:$0xff] %v2658_v14  ;;  %4339 = vst [vmem:[#allocation13_spill] sm:$0xff] %v2670_v19  ;;  %v4343_v14 = vsub.f32 %v4342_v4, %v2130_v55  ;;  %v4350_v5 = vsub.f32 %v4349_v13, %v2162_v41  ;;  %v4355_v33 = vld [vmem:[#allocation38_spill] sm:$0xff]  ;;  %v632_v41 = vsel %vm278_vm0, %v2635_v8, 0.0  ;;  %1651 = vpow2.f32 %v2462_v9 }
  0x63   : > { %v2663_v10 = vmul.f32 1.442695, %v4334_v27  ;;  %v2668_v57 = vmul.f32 1.442695, %v4337_v25  ;;  %v4344_v27 = vld [vmem:[#allocation27_spill] sm:$0xff]  ;;  %v2688_v25 = vpop.eup %1623  ;;  %1653 = vpow2.f32 %v2467_v60 }
  0x64   : > { %v2681_v12 = vmul.f32 1.442695, %v4343_v14  ;;  %4346 = vst [vmem:[#allocation15_spill] sm:$0xff] %v2688_v25  ;;  %v2699_v55 = vmul.f32 1.442695, %v4350_v5  ;;  %v4351_v14 = vld [vmem:[#allocation30_spill] sm:$0xff]  ;;  %1655 = vpow2.f32 %v2472_v29 }
  0x65   : > { %4335 = vst [vmem:[#allocation31_spill] sm:$0xff] %v2663_v10  ;;  %4338 = vst [vmem:[#allocation41_spill] sm:$0xff] %v2668_v57  ;;  %v4345_v10 = vsub.f32 %v4344_v27, %v2145_v49  ;;  %v4348_v57 = vsub.f32 %v4347_v17, %v2147_v48  ;;  %v4352_v4 = vsub.f32 %v4351_v14, %v2174_v47  ;;  %v683_v40 = vsel %vm278_vm0, %v2688_v25, 0.0 }
  0x66   : > { %v4356_v27 = vsub.f32 %v4355_v33, %v2245_v0  ;;  %v4359_v47 = vsub.f32 %v4235_v2, %v2281_v30  ;;  %v648_v0 = vsel %vm278_vm0, %v2516_v63, 0.0  ;;  %v4362_v14 = vsub.f32 %v4236_v23, %v2295_v3 }
  0x67   : > { %v2686_v11 = vmul.f32 1.442695, %v4345_v10  ;;  %v2694_v35 = vmul.f32 1.442695, %v4348_v57  ;;  %v2704_v49 = vmul.f32 1.442695, %v4352_v4  ;;  %v2706_v10 = vpop.eup %1625  ;;  %v650_v23 = vadd.f32 %v649_v37, %v648_v0 }
  0x68   : > { %4354 = vst [vmem:[#allocation32_spill] sm:$0xff] %v2706_v10  ;;  %v2712_v48 = vmul.f32 1.442695, %v4356_v27  ;;  %v631_v57 = vsel %vm278_vm0, %v2499_v26, 0.0  ;;  %v2718_v5 = vpop.eup %1627  ;;  %v2724_v17 = vmul.f32 1.442695, %v4359_v47  ;;  %1657 = vpow2.f32 %v2477_v46 }
  0x69   : > { %4353 = vst [vmem:[#allocation16_spill] sm:$0xff] %v2704_v49  ;;  %4358 = vst [vmem:[#allocation46_spill] sm:$0xff] %v2718_v5  ;;  %v2730_v13 = vpop.eup %1629  ;;  %v2736_v4 = vmul.f32 1.442695, %v4362_v14  ;;  %v633_v61 = vadd.f32 %v632_v41, %v631_v57  ;;  %v665_v2 = vsel %vm278_vm0, %v2533_v1, 0.0  ;;  %v666_v33 = vsel %vm278_vm0, %v2670_v19, 0.0 }
  0x6a   : > { %4357 = vst [vmem:[#allocation42_spill] sm:$0xff] %v2712_v48  ;;  %4360 = vst [vmem:[#allocation20_spill] sm:$0xff] %v2724_v17  ;;  %v2740_v30 = vpop.eup %1631  ;;  %v682_v27 = vsel %vm278_vm0, %v2550_v59, 0.0  ;;  %v699_v57 = vsel %vm278_vm0, %v2567_v6, 0.0  ;;  %v700_v9 = vsel %vm278_vm0, %v2706_v10, 0.0  ;;  %v716_v14 = vsel %vm278_vm0, %v2584_v18, 0.0 }
  0x6b   : > { %4361 = vst [vmem:[#allocation21_spill] sm:$0xff] %v2730_v13  ;;  %4363 = vst [vmem:[#allocation22_spill] sm:$0xff] %v2736_v4  ;;  %v2749_v3 = vpop.eup %1633  ;;  %v717_v60 = vsel %vm278_vm0, %v2718_v5, 0.0  ;;  %v667_v4 = vadd.f32 %v666_v33, %v665_v2  ;;  %v684_v17 = vadd.f32 %v683_v40, %v682_v27  ;;  %1659 = vpow2.f32 %v2482_v15 }
  0x6c   : > { %4364 = vst [vmem:[#allocation24_spill] sm:$0xff] %v2740_v30  ;;  %4365 = vst [vmem:[#allocation35_spill] sm:$0xff] %v2749_v3  ;;  %v2756_v41 = vpop.eup %1635  ;;  %v634_v47 = vsel %vm278_vm0, %v2749_v3, 0.0  ;;  %v701_v3 = vadd.f32 %v700_v9, %v699_v57  ;;  %v733_v10 = vsel %vm278_vm0, %v2601_v42, 0.0  ;;  %1661 = vpow2.f32 %v2487_v7 }
  0x6d   : > { %4366 = vst [vmem:[#allocation44_spill] sm:$0xff] %v2756_v41  ;;  %v2765_v0 = vpop.eup %1637  ;;  %v651_v37 = vsel %vm278_vm0, %v2756_v41, 0.0  ;;  %v635_v29 = vadd.f32 %v634_v47, %v633_v61  ;;  %v718_v5 = vadd.f32 %v717_v60, %v716_v14  ;;  %v734_v2 = vsel %vm278_vm0, %v2730_v13, 0.0 }
  0x6e   : > { %4367 = vst [vmem:[#allocation26_spill] sm:$0xff] %v2765_v0  ;;  %v2770_v48 = vpop.eup %1639  ;;  %v668_v46 = vsel %vm278_vm0, %v2765_v0, 0.0  ;;  %1663 = vpow2.f32 %v2492_v20  ;;  %v652_v15 = vadd.f32 %v651_v37, %v650_v23  ;;  %v735_v57 = vadd.f32 %v734_v2, %v733_v10 }
  0x6f   : > { %4368 = vst [vmem:[#allocation27_spill] sm:$0xff] %v2770_v48  ;;  %v2775_v49 = vpop.eup %1641  ;;  %v685_v61 = vsel %vm278_vm0, %v2770_v48, 0.0  ;;  %1665 = vpow2.f32 %v2497_v21  ;;  %v750_v9 = vsel %vm278_vm0, %v2618_v62, 0.0  ;;  %v669_v20 = vadd.f32 %v668_v46, %v667_v4 }
  0x70   : > { %4369 = vst [vmem:[#allocation28_spill] sm:$0xff] %v2775_v49  ;;  %v2782_v33 = vpop.eup %1643  ;;  %v702_v27 = vsel %vm278_vm0, %v2775_v49, 0.0  ;;  %1667 = vpow2.f32 %v2504_v28  ;;  %v751_v14 = vsel %vm278_vm0, %v2740_v30, 0.0  ;;  %v686_v21 = vadd.f32 %v685_v61, %v684_v17 }
  0x71   : > { %4370 = vst [vmem:[#allocation29_spill] sm:$0xff] %v2782_v33  ;;  %v2789_v40 = vpop.eup %1645  ;;  %v719_v7 = vsel %vm278_vm0, %v2782_v33, 0.0  ;;  %1669 = vpow2.f32 %v2509_v31  ;;  %v703_v10 = vadd.f32 %v702_v27, %v701_v3  ;;  %v752_v37 = vadd.f32 %v751_v14, %v750_v9  ;;  %v4376_v3 = vld [vmem:[#allocation17_spill] sm:$0xff] }
  0x72   : > { %4371 = vst [vmem:[#allocation30_spill] sm:$0xff] %v2789_v40  ;;  %v2796_v47 = vpop.eup %1647  ;;  %v736_v23 = vsel %vm278_vm0, %v2789_v40, 0.0  ;;  %1671 = vpow2.f32 %v2514_v36  ;;  %v720_v4 = vadd.f32 %v719_v7, %v718_v5  ;;  %v2820_v61 = vrot.slane %v4376_v3, %v4240_v24 }
  0x73   : > { %4372 = vst [vmem:[#allocation38_spill] sm:$0xff] %v2796_v47  ;;  %v2803_v60 = vpop.eup %1649  ;;  %v753_v46 = vsel %vm278_vm0, %v2796_v47, 0.0  ;;  %1673 = vpow2.f32 %v2521_v32  ;;  %v737_v17 = vadd.f32 %v736_v23, %v735_v57  ;;  %v4378_v32 = vcombine.high %v4241_v44, %v4241_v44 }
  0x74   : > { %4373 = vst [vmem:[#allocation48_spill] sm:$0xff] %v2803_v60  ;;  %v2806_v2 = vpop.eup %1651  ;;  %v636_v28 = vsel %vm278_vm0, %v2803_v60, 0.0  ;;  %1675 = vpow2.f32 %v2526_v38  ;;  %v754_v38 = vadd.f32 %v753_v46, %v752_v37  ;;  %v4383_v46 = vld [vmem:[#allocation5_spill] sm:$0xff] }
  0x75   : > { %4374 = vst [vmem:[#allocation49_spill] sm:$0xff] %v2806_v2  ;;  %v2813_v40 = vpop.eup %1653  ;;  %v653_v31 = vsel %vm278_vm0, %v2806_v2, 0.0  ;;  %v637_v5 = vadd.f32 %v636_v28, %v635_v29  ;;  %v2831_v7 = vrot.slane %v4378_v32, %v4240_v24  ;;  %1677 = vpow2.f32 %v2531_v39 }
  0x76   : > { %4375 = vst [vmem:[#allocation50_spill] sm:$0xff] %v2813_v40  ;;  %v2822_v36 = vpop.eup %1655  ;;  %v670_v27 = vsel %vm278_vm0, %v2813_v40, 0.0  ;;  %v654_v57 = vadd.f32 %v653_v31, %v652_v15  ;;  %1679 = vpow2.f32 %v2538_v45  ;;  %v4381_v28 = vcombine.high %v4376_v3, %v4376_v3  ;;  %v2896_v40 = vld [vmem:[%s1828_s17 + $0x10] sm:$0xff] }
  0x77   : > { %4377 = vst [vmem:[#allocation17_spill] sm:$0xff] %v2822_v36  ;;  %v2833_v9 = vpop.eup %1657  ;;  %v687_v23 = vsel %vm278_vm0, %v2822_v36, 0.0  ;;  %v671_v14 = vadd.f32 %v670_v27, %v669_v20  ;;  %1681 = vpow2.f32 %v2543_v50  ;;  %v826_v45 = vcombine.high %v4383_v46, %v4383_v46  ;;  %v2862_v27 = vld.sshfl [vmem:[%s1828_s17 + $0x8] sm:$0x1 pattern:$0x75316420] }
  0x78   : > { %4379 = vst [vmem:[#allocation51_spill] sm:$0xff] %v2833_v9  ;;  %v2838_v29 = vpop.eup %1659  ;;  %v704_v44 = vsel %vm278_vm0, %v2833_v9, 0.0  ;;  %v2847_v32 = vrot.slane %v4381_v28, %v4240_v24  ;;  %v688_v15 = vadd.f32 %v687_v23, %v686_v21  ;;  %1683 = vpow2.f32 %v2548_v52  ;;  %4391 = vst [vmem:[#allocation58_spill] sm:$0xff] %v2896_v40 }
  0x79   : > { %4380 = vst [vmem:[#allocation52_spill] sm:$0xff] %v2838_v29  ;;  %v2849_v39 = vpop.eup %1661  ;;  %v721_v37 = vsel %vm278_vm0, %v2838_v29, 0.0  ;;  %v705_v31 = vadd.f32 %v704_v44, %v703_v10  ;;  %v827_v50 = vcombine.high %v2820_v61, %v2820_v61  ;;  %1685 = vpow2.f32 %v2555_v58  ;;  %v4387_v29 = vld [vmem:[#allocation2_spill] sm:$0xff] }
  0x7a   : > { %4382 = vst [vmem:[#allocation53_spill] sm:$0xff] %v2849_v39  ;;  %v2856_v20 = vpop.eup %1663  ;;  %v738_v3 = vsel %vm278_vm0, %v2849_v39, 0.0  ;;  %v722_v23 = vadd.f32 %v721_v37, %v720_v4  ;;  %v828_v52 = vcombine.high %v2831_v7, %v2831_v7  ;;  %1687 = vpow2.f32 %v2560_v54 }
  0x7b   : > { %4384 = vst [vmem:[#allocation5_spill] sm:$0xff] %v2856_v20  ;;  %v2866_v21 = vpop.eup %1665  ;;  %v755_v28 = vsel %vm278_vm0, %v2856_v20, 0.0  ;;  %v829_v39 = vcombine.high %v2847_v32, %v2847_v32  ;;  %v2881_v58 = vsub.s32 0, %v4387_v29  ;;  %1689 = vpow2.f32 %v2565_v16 }
  0x7c   : > { %4385 = vst [vmem:[#allocation54_spill] sm:$0xff] %v2866_v21  ;;  %v2873_v10 = vpop.eup %1667  ;;  %v638_v44 = vsel %vm278_vm0, %v2866_v21, 0.0  ;;  %v739_v20 = vadd.f32 %v738_v3, %v737_v17  ;;  %v843_v54 = vrot.slane %v2862_v27, %v4240_v24  ;;  %1691 = vpow2.f32 %v2572_v43  ;;  %v4394_v43 = vld [vmem:[#allocation37_spill] sm:$0xff] }
  0x7d   : > { %4386 = vst [vmem:[#allocation55_spill] sm:$0xff] %v2873_v10  ;;  %4388 = vst [vmem:[#allocation2_spill] sm:$0xff] %v2881_v58  ;;  %v2883_v4 = vpop.eup %1669  ;;  %v655_v37 = vsel %vm278_vm0, %v2873_v10, 0.0  ;;  %v639_v21 = vadd.f32 %v638_v44, %v637_v5  ;;  %v756_v36 = vadd.f32 %v755_v28, %v754_v38  ;;  %1693 = vpow2.f32 %v2577_v51 }
  0x7e   : > { %4389 = vst [vmem:[#allocation56_spill] sm:$0xff] %v2883_v4  ;;  %v2890_v9 = vpop.eup %1671  ;;  %v672_v29 = vsel %vm278_vm0, %v2883_v4, 0.0  ;;  %v656_v16 = vadd.f32 %v655_v37, %v654_v57  ;;  %1695 = vpow2.f32 %v4394_v43  ;;  %v2912_v28 = vrot.slane %v4383_v46, %v2881_v58  ;;  %v4396_v57 = vld [vmem:[#allocation40_spill] sm:$0xff] }
  0x7f   : > { %4390 = vst [vmem:[#allocation57_spill] sm:$0xff] %v2890_v9  ;;  %v2898_v2 = vpop.eup %1673  ;;  %v689_v17 = vsel %vm278_vm0, %v2890_v9, 0.0  ;;  %v673_v5 = vadd.f32 %v672_v29, %v671_v14  ;;  %1697 = vpow2.f32 %v4396_v57  ;;  %v2921_v3 = vrot.slane %v2831_v7, %v2881_v58  ;;  %v4398_v29 = vld [vmem:[#allocation36_spill] sm:$0xff] }
  0x80   : > { %4392 = vst [vmem:[#allocation59_spill] sm:$0xff] %v2898_v2  ;;  %v2905_v27 = vpop.eup %1675  ;;  %v706_v38 = vsel %vm278_vm0, %v2898_v2, 0.0  ;;  %v690_v44 = vadd.f32 %v689_v17, %v688_v15  ;;  %1699 = vpow2.f32 %v4398_v29  ;;  %v2929_v40 = vrot.slane %v826_v45, %v2881_v58  ;;  %v4400_v15 = vld [vmem:[#allocation39_spill] sm:$0xff] }
  0x81   : > { %4393 = vst [vmem:[#allocation60_spill] sm:$0xff] %v2905_v27  ;;  %v2914_v51 = vpop.eup %1677  ;;  %v723_v37 = vsel %vm278_vm0, %v2905_v27, 0.0  ;;  %v707_v43 = vadd.f32 %v706_v38, %v705_v31  ;;  %1701 = vpow2.f32 %v4400_v15  ;;  %v2937_v24 = vrot.slane %v828_v52, %v2881_v58  ;;  %v4402_v31 = vld [vmem:[#allocation19_spill] sm:$0xff] }
  0x82   : > { %4395 = vst [vmem:[#allocation37_spill] sm:$0xff] %v2914_v51  ;;  %v2923_v14 = vpop.eup %1679  ;;  %v740_v46 = vsel %vm278_vm0, %v2914_v51, 0.0  ;;  %v724_v17 = vadd.f32 %v723_v37, %v722_v23  ;;  %1703 = vpow2.f32 %v4402_v31  ;;  %v2946_v29 = vrot.slane %v2820_v61, %v2881_v58 }
  0x83   : > { %4397 = vst [vmem:[#allocation40_spill] sm:$0xff] %v2923_v14  ;;  %v2931_v57 = vpop.eup %1681  ;;  %v757_v7 = vsel %vm278_vm0, %v2923_v14, 0.0  ;;  %v741_v45 = vadd.f32 %v740_v46, %v739_v20  ;;  %1705 = vpow2.f32 %v2611_v53  ;;  %v2955_v37 = vrot.slane %v2847_v32, %v2881_v58  ;;  %v4408_v14 = vld [vmem:[#allocation4_spill] sm:$0xff] }
  0x84   : > { %4399 = vst [vmem:[#allocation36_spill] sm:$0xff] %v2931_v57  ;;  %v2939_v27 = vpop.eup %1683  ;;  %v640_v38 = vsel %vm278_vm0, %v2931_v57, 0.0  ;;  %v758_v52 = vadd.f32 %v757_v7, %v756_v36  ;;  %v4405_v57 = vld [vmem:[#allocation45_spill] sm:$0xff]  ;;  %v2963_v46 = vrot.slane %v827_v50, %v2881_v58  ;;  %v2971_v7 = vrot.slane %v829_v39, %v2881_v58 }
  0x85   : > { %4401 = vst [vmem:[#allocation39_spill] sm:$0xff] %v2939_v27  ;;  %v2948_v15 = vpop.eup %1685  ;;  %v657_v23 = vsel %vm278_vm0, %v2939_v27, 0.0  ;;  %1707 = vpow2.f32 %v4405_v57  ;;  %v641_v20 = vadd.f32 %v640_v38, %v639_v21  ;;  %v4410_v21 = vld [vmem:[#allocation43_spill] sm:$0xff]  ;;  %v2979_v38 = vrot.slane %v843_v54, %v2881_v58 }
  0x86   : > { %4403 = vst [vmem:[#allocation19_spill] sm:$0xff] %v2948_v15  ;;  %v2957_v31 = vpop.eup %1687  ;;  %v674_v61 = vsel %vm278_vm0, %v2948_v15, 0.0  ;;  %4406 = vst [vmem:[#allocation45_spill] sm:$0xff] %v2963_v46  ;;  %1709 = vpow2.f32 %v4408_v14  ;;  %v658_v36 = vadd.f32 %v657_v23, %v656_v16  ;;  %v2988_v14 = vmul.f32 %v2499_v26, %v2912_v28 }
  0x87   : > { %4404 = vst [vmem:[#allocation61_spill] sm:$0xff] %v2957_v31  ;;  %v2965_v53 = vpop.eup %1689  ;;  %v691_v32 = vsel %vm278_vm0, %v2957_v31, 0.0  ;;  %1711 = vpow2.f32 %v4410_v21  ;;  %v675_v57 = vadd.f32 %v674_v61, %v673_v5  ;;  %v4413_v5 = vld [vmem:[#allocation8_spill] sm:$0xff]  ;;  %v2997_v21 = vmul.f32 %v2516_v63, %v2912_v28 }
  0x88   : > { %4407 = vst [vmem:[#allocation62_spill] sm:$0xff] %v2965_v53  ;;  %v2973_v27 = vpop.eup %1691  ;;  %v708_v50 = vsel %vm278_vm0, %v2965_v53, 0.0  ;;  %1713 = vpow2.f32 %v2633_v56  ;;  %v692_v16 = vadd.f32 %v691_v32, %v690_v44  ;;  %v4416_v44 = vld [vmem:[#allocation9_spill] sm:$0xff]  ;;  %v3006_v58 = vmul.f32 %v2533_v1, %v2912_v28 }
  0x89   : > { %4409 = vst [vmem:[#allocation4_spill] sm:$0xff] %v2973_v27  ;;  %v2981_v46 = vpop.eup %1693  ;;  %v725_v39 = vsel %vm278_vm0, %v2973_v27, 0.0  ;;  %1715 = vpow2.f32 %v4413_v5  ;;  %v709_v61 = vadd.f32 %v708_v50, %v707_v43  ;;  %4414 = vst [vmem:[#allocation8_spill] sm:$0xff] %v2997_v21  ;;  %v3015_v63 = vmul.f32 %v2550_v59, %v2912_v28  ;;  %v4424_v21 = vld [vmem:[#allocation31_spill] sm:$0xff] }
  0x8a   : > { %4411 = vst [vmem:[#allocation43_spill] sm:$0xff] %v2981_v46  ;;  %v2990_v23 = vpop.eup %1695  ;;  %v742_v54 = vsel %vm278_vm0, %v2981_v46, 0.0  ;;  %1717 = vpow2.f32 %v4416_v44  ;;  %v726_v32 = vadd.f32 %v725_v39, %v724_v17  ;;  %4417 = vst [vmem:[#allocation9_spill] sm:$0xff] %v3006_v58  ;;  %v4421_v39 = vld [vmem:[#allocation11_spill] sm:$0xff]  ;;  %v3024_v58 = vmul.f32 %v2567_v6, %v2912_v28 }
  0x8b   : > { %4412 = vst [vmem:[#allocation63_spill] sm:$0xff] %v2990_v23  ;;  %v2999_v56 = vpop.eup %1697  ;;  %v759_v26 = vsel %vm278_vm0, %v2990_v23, 0.0  ;;  %1719 = vpow2.f32 %v2650_v22  ;;  %v743_v5 = vadd.f32 %v742_v54, %v741_v45  ;;  %4419 = vst [vmem:[#allocation66_spill] sm:$0xff] %v3015_v63  ;;  %v3033_v59 = vmul.f32 %v2584_v18, %v2912_v28  ;;  %v4427_v63 = vld [vmem:[#allocation41_spill] sm:$0xff] }
  0x8c   : > { %4415 = vst [vmem:[#allocation64_spill] sm:$0xff] %v2999_v56  ;;  %v3008_v43 = vpop.eup %1699  ;;  %v642_v50 = vsel %vm278_vm0, %v2999_v56, 0.0  ;;  %1721 = vpow2.f32 %v4421_v39  ;;  %v760_v1 = vadd.f32 %v759_v26, %v758_v52  ;;  %4422 = vst [vmem:[#allocation11_spill] sm:$0xff] %v3024_v58  ;;  %v3042_v6 = vmul.f32 %v2601_v42, %v2912_v28 }
  0x8d   : > { %4418 = vst [vmem:[#allocation65_spill] sm:$0xff] %v3008_v43  ;;  %v3017_v17 = vpop.eup %1701  ;;  %v659_v44 = vsel %vm278_vm0, %v3008_v43, 0.0  ;;  %1723 = vpow2.f32 %v4424_v21  ;;  %v643_v45 = vadd.f32 %v642_v50, %v641_v20  ;;  %4425 = vst [vmem:[#allocation31_spill] sm:$0xff] %v3033_v59  ;;  %v4430_v21 = vld [vmem:[#allocation14_spill] sm:$0xff]  ;;  %v3051_v59 = vmul.f32 %v2618_v62, %v2912_v28  ;;  %v4439_v62 = vld [vmem:[#allocation32_spill] sm:$0xff] }
  0x8e   : > { %4420 = vst [vmem:[#allocation67_spill] sm:$0xff] %v3017_v17  ;;  %v3026_v22 = vpop.eup %1703  ;;  %v676_v54 = vsel %vm278_vm0, %v3017_v17, 0.0  ;;  %1725 = vpow2.f32 %v4427_v63  ;;  %v660_v26 = vadd.f32 %v659_v44, %v658_v36  ;;  %4428 = vst [vmem:[#allocation41_spill] sm:$0xff] %v3042_v6  ;;  %v3060_v42 = vmul.f32 %v2635_v8, %v2921_v3  ;;  %v4442_v6 = vld [vmem:[#allocation42_spill] sm:$0xff] }
  0x8f   : > { %4423 = vst [vmem:[#allocation68_spill] sm:$0xff] %v3026_v22  ;;  %v3035_v39 = vpop.eup %1705  ;;  %v693_v52 = vsel %vm278_vm0, %v3026_v22, 0.0  ;;  %1727 = vpow2.f32 %v4430_v21  ;;  %v677_v50 = vadd.f32 %v676_v54, %v675_v57  ;;  %4431 = vst [vmem:[#allocation14_spill] sm:$0xff] %v3051_v59  ;;  %v3069_v21 = vmul.f32 %v2652_v34, %v2921_v3 }
  0x90   : > { %4426 = vst [vmem:[#allocation69_spill] sm:$0xff] %v3035_v39  ;;  %v3044_v20 = vpop.eup %1707  ;;  %v710_v18 = vsel %vm278_vm0, %v3035_v39, 0.0  ;;  %1729 = vpow2.f32 %v2681_v12  ;;  %v694_v36 = vadd.f32 %v693_v52, %v692_v16  ;;  %v3078_v8 = vmul.f32 %v2670_v19, %v2921_v3 }
  0x91   : > { %4429 = vst [vmem:[#allocation70_spill] sm:$0xff] %v3044_v20  ;;  %v3053_v63 = vpop.eup %1709  ;;  %v727_v44 = vsel %vm278_vm0, %v3044_v20, 0.0  ;;  %1731 = vpow2.f32 %v2686_v11  ;;  %v711_v54 = vadd.f32 %v710_v18, %v709_v61  ;;  %v3087_v34 = vmul.f32 %v2688_v25, %v2921_v3  ;;  %v4443_v25 = vld [vmem:[#allocation46_spill] sm:$0xff] }
  0x92   : > { %4432 = vst [vmem:[#allocation71_spill] sm:$0xff] %v3053_v63  ;;  %v3062_v57 = vpop.eup %1711  ;;  %v744_v28 = vsel %vm278_vm0, %v3053_v63, 0.0  ;;  %1733 = vpow2.f32 %v2694_v35  ;;  %v728_v16 = vadd.f32 %v727_v44, %v726_v32  ;;  %v4438_v32 = vld [vmem:[#allocation16_spill] sm:$0xff]  ;;  %v3096_v59 = vmul.f32 %v4439_v62, %v2921_v3 }
  0x93   : > { %4433 = vst [vmem:[#allocation72_spill] sm:$0xff] %v3062_v57  ;;  %v3071_v12 = vpop.eup %1713  ;;  %v761_v52 = vsel %vm278_vm0, %v3062_v57, 0.0  ;;  %1735 = vpow2.f32 %v2699_v55  ;;  %v745_v61 = vadd.f32 %v744_v28, %v743_v5  ;;  %4436 = vst [vmem:[#allocation75_spill] sm:$0xff] %v3087_v34  ;;  %v3105_v58 = vmul.f32 %v4443_v25, %v2921_v3  ;;  %v4446_v34 = vld [vmem:[#allocation20_spill] sm:$0xff] }
  0x94   : > { %4434 = vst [vmem:[#allocation73_spill] sm:$0xff] %v3071_v12  ;;  %v3080_v18 = vpop.eup %1715  ;;  %v644_v11 = vsel %vm278_vm0, %v3071_v12, 0.0  ;;  %1737 = vpow2.f32 %v4438_v32  ;;  %v762_v19 = vadd.f32 %v761_v52, %v760_v1  ;;  %4440 = vst [vmem:[#allocation16_spill] sm:$0xff] %v3096_v59  ;;  %v3114_v62 = vmul.f32 %v2730_v13, %v2921_v3  ;;  %v4452_v13 = vld [vmem:[#allocation35_spill] sm:$0xff]  ;;  %v4459_v59 = vld [vmem:[#allocation30_spill] sm:$0xff] }
  0x95   : > { %4435 = vst [vmem:[#allocation74_spill] sm:$0xff] %v3080_v18  ;;  %v3089_v35 = vpop.eup %1717  ;;  %v661_v44 = vsel %vm278_vm0, %v3080_v18, 0.0  ;;  %1739 = vpow2.f32 %v4442_v6  ;;  %v645_v5 = vadd.f32 %v644_v11, %v643_v45  ;;  %4444 = vst [vmem:[#allocation42_spill] sm:$0xff] %v3105_v58  ;;  %v4449_v45 = vld [vmem:[#allocation22_spill] sm:$0xff]  ;;  %v3123_v58 = vmul.f32 %v2740_v30, %v2921_v3 }
  0x96   : > { %4437 = vst [vmem:[#allocation76_spill] sm:$0xff] %v3089_v35  ;;  %v3098_v55 = vpop.eup %1719  ;;  %v678_v28 = vsel %vm278_vm0, %v3089_v35, 0.0  ;;  %1741 = vpow2.f32 %v4446_v34  ;;  %v662_v1 = vadd.f32 %v661_v44, %v660_v26  ;;  %4447 = vst [vmem:[#allocation20_spill] sm:$0xff] %v3114_v62  ;;  %v3131_v62 = vmul.f32 %v4452_v13, %v2929_v40 }
  0x97   : > { %4441 = vst [vmem:[#allocation77_spill] sm:$0xff] %v3098_v55  ;;  %v3107_v32 = vpop.eup %1721  ;;  %v695_v52 = vsel %vm278_vm0, %v3098_v55, 0.0  ;;  %1743 = vpow2.f32 %v4449_v45  ;;  %v679_v11 = vadd.f32 %v678_v28, %v677_v50  ;;  %4450 = vst [vmem:[#allocation22_spill] sm:$0xff] %v3123_v58  ;;  %v3135_v50 = vmul.f32 %v2756_v41, %v2929_v40 }
  0x98   : > { %4445 = vst [vmem:[#allocation78_spill] sm:$0xff] %v3107_v32  ;;  %v3116_v6 = vpop.eup %1723  ;;  %v712_v25 = vsel %vm278_vm0, %v3107_v32, 0.0  ;;  %v696_v26 = vadd.f32 %v695_v52, %v694_v36  ;;  %v3143_v36 = vmul.f32 %v2765_v0, %v2929_v40  ;;  %v3147_v52 = vmul.f32 %v2770_v48, %v2929_v40 }
  0x99   : > { %4448 = vst [vmem:[#allocation79_spill] sm:$0xff] %v3116_v6  ;;  %v3125_v34 = vpop.eup %1725  ;;  %v729_v44 = vsel %vm278_vm0, %v3116_v6, 0.0  ;;  %v713_v45 = vadd.f32 %v712_v25, %v711_v54  ;;  %v3155_v25 = vmul.f32 %v2775_v49, %v2929_v40  ;;  %v3159_v54 = vmul.f32 %v2782_v33, %v2929_v40 }
  0x9a   : > { %4451 = vst [vmem:[#allocation80_spill] sm:$0xff] %v3125_v34  ;;  %v3137_v28 = vpop.eup %1727  ;;  %v746_v3 = vsel %vm278_vm0, %v3125_v34, 0.0  ;;  %4454 = vst [vmem:[#allocation82_spill] sm:$0xff] %v3147_v52  ;;  %v730_v30 = vadd.f32 %v729_v44, %v728_v16  ;;  %v3167_v16 = vmul.f32 %v4459_v59, %v2929_v40  ;;  %v3171_v44 = vmul.f32 %v2796_v47, %v2929_v40  ;;  %v4464_v40 = vld [vmem:[#allocation49_spill] sm:$0xff] }
  0x9b   : > { %4453 = vst [vmem:[#allocation81_spill] sm:$0xff] %v3137_v28  ;;  %v3149_v13 = vpop.eup %1729  ;;  %v763_v41 = vsel %vm278_vm0, %v3137_v28, 0.0  ;;  %4456 = vst [vmem:[#allocation84_spill] sm:$0xff] %v3155_v25  ;;  %v747_v58 = vadd.f32 %v746_v3, %v745_v61  ;;  %v3179_v52 = vmul.f32 %v2803_v60, %v2937_v24  ;;  %v3187_v47 = vmul.f32 %v4464_v40, %v2937_v24 }
  0x9c   : > { %4455 = vst [vmem:[#allocation83_spill] sm:$0xff] %v3149_v13  ;;  %4457 = vst [vmem:[#allocation85_spill] sm:$0xff] %v3159_v54  ;;  %v3161_v0 = vpop.eup %1731  ;;  %v646_v48 = vsel %vm278_vm0, %v3149_v13, 0.0  ;;  %v764_v54 = vadd.f32 %v763_v41, %v762_v19 }
  0x9d   : > { %4458 = vst [vmem:[#allocation86_spill] sm:$0xff] %v3161_v0  ;;  %4460 = vst [vmem:[#allocation87_spill] sm:$0xff] %v3167_v16  ;;  %v3173_v49 = vpop.eup %1733  ;;  %v647_v25 = vadd.f32 %v646_v48, %v645_v5  ;;  %v663_v33 = vsel %vm278_vm0, %v3161_v0, 0.0  ;;  %v4465_v48 = vld [vmem:[#allocation50_spill] sm:$0xff] }
  0x9e   : > { %4461 = vst [vmem:[#allocation88_spill] sm:$0xff] %v3171_v44  ;;  %4462 = vst [vmem:[#allocation89_spill] sm:$0xff] %v3173_v49  ;;  %v3181_v61 = vpop.eup %1735  ;;  %v664_v3 = vadd.f32 %v663_v33, %v662_v1  ;;  %v680_v59 = vsel %vm278_vm0, %v3173_v49, 0.0  ;;  %v3191_v5 = vmul.f32 %v4465_v48, %v2937_v24  ;;  %v4468_v33 = vld [vmem:[#allocation17_spill] sm:$0xff]  ;;  %v4471_v48 = vld [vmem:[#allocation51_spill] sm:$0xff] }
  0x9f   : > { %4463 = vst [vmem:[#allocation90_spill] sm:$0xff] %v3181_v61  ;;  %v3193_v44 = vpop.eup %1737  ;;  %v681_v19 = vadd.f32 %v680_v59, %v679_v11  ;;  %v697_v41 = vsel %vm278_vm0, %v3181_v61, 0.0  ;;  %1745 = vrcp.f32 %v647_v25  ;;  %v3199_v1 = vmul.f32 %v4468_v33, %v2937_v24  ;;  %v4474_v33 = vld [vmem:[#allocation52_spill] sm:$0xff] }
  0xa0   : > { %4466 = vst [vmem:[#allocation91_spill] sm:$0xff] %v3191_v5  ;;  %4467 = vst [vmem:[#allocation92_spill] sm:$0xff] %v3193_v44  ;;  %v3201_v60 = vpop.eup %1739  ;;  %v698_v16 = vadd.f32 %v697_v41, %v696_v26  ;;  %v714_v40 = vsel %vm278_vm0, %v3193_v44, 0.0  ;;  %1747 = vrcp.f32 %v664_v3  ;;  %v3207_v5 = vmul.f32 %v4471_v48, %v2937_v24  ;;  %v4476_v48 = vld [vmem:[#allocation53_spill] sm:$0xff] }
  0xa1   : > { %4469 = vst [vmem:[#allocation93_spill] sm:$0xff] %v3199_v1  ;;  %4470 = vst [vmem:[#allocation94_spill] sm:$0xff] %v3201_v60  ;;  %v3209_v59 = vpop.eup %1741  ;;  %v715_v11 = vadd.f32 %v714_v40, %v713_v45  ;;  %v731_v25 = vsel %vm278_vm0, %v3201_v60, 0.0  ;;  %1749 = vrcp.f32 %v681_v19  ;;  %v3215_v1 = vmul.f32 %v4474_v33, %v2937_v24  ;;  %v4477_v19 = vld [vmem:[#allocation5_spill] sm:$0xff] }
  0xa2   : > { %4472 = vst [vmem:[#allocation95_spill] sm:$0xff] %v3207_v5  ;;  %4473 = vst [vmem:[#allocation96_spill] sm:$0xff] %v3209_v59  ;;  %v3217_v26 = vpop.eup %1743  ;;  %v732_v41 = vadd.f32 %v731_v25, %v730_v30  ;;  %v748_v3 = vsel %vm278_vm0, %v3209_v59, 0.0  ;;  %1751 = vrcp.f32 %v698_v16  ;;  %v3223_v5 = vmul.f32 %v4476_v48, %v2937_v24  ;;  %v4478_v30 = vld [vmem:[#allocation54_spill] sm:$0xff] }
  0xa3   : > { %4475 = vst [vmem:[#allocation97_spill] sm:$0xff] %v3215_v1  ;;  %v749_v45 = vadd.f32 %v748_v3, %v747_v58  ;;  %v765_v40 = vsel %vm278_vm0, %v3217_v26, 0.0  ;;  %1753 = vrcp.f32 %v715_v11  ;;  %v3229_v33 = vmul.f32 %v4477_v19, %v2937_v24 }
  0xa4   : > { %v766_v1 = vadd.f32 %v765_v40, %v764_v54  ;;  %1755 = vrcp.f32 %v732_v41  ;;  %v921_v25 = vmul.f32 %v4478_v30, %v2946_v29  ;;  %v3235_v16 = vmul.f32 %v2873_v10, %v2946_v29  ;;  %v4479_v54 = vld [vmem:[#allocation60_spill] sm:$0xff]  ;;  %v4482_v10 = vld [vmem:[#allocation39_spill] sm:$0xff] }
  0xa5   : > { %1757 = vrcp.f32 %v749_v45  ;;  %v3239_v58 = vmul.f32 %v2883_v4, %v2946_v29  ;;  %v3243_v11 = vmul.f32 %v2890_v9, %v2946_v29  ;;  %v3247_v24 = vmul.f32 %v2898_v2, %v2946_v29  ;;  %v4480_v45 = vld [vmem:[#allocation40_spill] sm:$0xff] }
  0xa6   : > { %1759 = vrcp.f32 %v766_v1  ;;  %v3251_v41 = vmul.f32 %v4479_v54, %v2946_v29  ;;  %v3255_v3 = vmul.f32 %v2914_v51, %v2946_v29  ;;  %v3259_v40 = vmul.f32 %v4480_v45, %v2946_v29  ;;  %v4481_v9 = vld [vmem:[#allocation36_spill] sm:$0xff] }
  0xa7   : > { %v929_v4 = vmul.f32 %v4481_v9, %v2955_v37  ;;  %v930_v2 = vmul.f32 %v4482_v10, %v2955_v37  ;;  %v3267_v1 = vmul.f32 %v2948_v15, %v2955_v37  ;;  %v3271_v54 = vmul.f32 %v2957_v31, %v2955_v37  ;;  %v4484_v31 = vld [vmem:[#allocation45_spill] sm:$0xff] }
  0xa8   : > { %v3275_v51 = vmul.f32 %v2965_v53, %v2955_v37  ;;  %v3279_v29 = vmul.f32 %v2973_v27, %v2955_v37  ;;  %v3283_v9 = vmul.f32 %v2981_v46, %v2955_v37  ;;  %v3287_v15 = vmul.f32 %v2990_v23, %v2955_v37 }
  0xa9   : > { %v3289_v10 = vpop.eup %1745  ;;  %v937_v45 = vmul.f32 %v2999_v56, %v4484_v31  ;;  %v938_v53 = vmul.f32 %v3008_v43, %v4484_v31  ;;  %v3297_v27 = vmul.f32 %v3017_v17, %v4484_v31  ;;  %v3301_v46 = vmul.f32 %v3026_v22, %v4484_v31 }
  0xaa   : > { %4483 = vst [vmem:[#allocation53_spill] sm:$0xff] %v3289_v10  ;;  %v3303_v30 = vpop.eup %1747  ;;  %v3307_v37 = vmul.f32 %v3035_v39, %v4484_v31  ;;  %v3311_v56 = vmul.f32 %v3044_v20, %v4484_v31  ;;  %v3315_v43 = vmul.f32 %v3053_v63, %v4484_v31  ;;  %v3319_v17 = vmul.f32 %v3062_v57, %v4484_v31 }
  0xab   : > { %4485 = vst [vmem:[#allocation45_spill] sm:$0xff] %v3303_v30  ;;  %v3321_v22 = vpop.eup %1749  ;;  %v945_v30 = vmul.f32 %v3071_v12, %v2971_v7  ;;  %v946_v39 = vmul.f32 %v3080_v18, %v2971_v7  ;;  %v947_v20 = vmul.f32 %v3089_v35, %v2971_v7  ;;  %v3331_v23 = vmul.f32 %v3098_v55, %v2971_v7 }
  0xac   : > { %4486 = vst [vmem:[#allocation98_spill] sm:$0xff] %v3321_v22  ;;  %v3333_v63 = vpop.eup %1751  ;;  %v3337_v31 = vmul.f32 %v3107_v32, %v2971_v7  ;;  %v3341_v22 = vmul.f32 %v3116_v6, %v2971_v7  ;;  %v3345_v18 = vmul.f32 %v3125_v34, %v2971_v7  ;;  %v3349_v35 = vmul.f32 %v3137_v28, %v2971_v7 }
  0xad   : > { %4487 = vst [vmem:[#allocation99_spill] sm:$0xff] %v3333_v63  ;;  %v3351_v55 = vpop.eup %1753  ;;  %v953_v63 = vmul.f32 %v3149_v13, %v2979_v38  ;;  %v954_v32 = vmul.f32 %v3161_v0, %v2979_v38  ;;  %v955_v6 = vmul.f32 %v3173_v49, %v2979_v38  ;;  %v3361_v12 = vmul.f32 %v3181_v61, %v2979_v38 }
  0xae   : > { %4488 = vst [vmem:[#allocation100_spill] sm:$0xff] %v3351_v55  ;;  %v3363_v34 = vpop.eup %1755  ;;  %v3367_v7 = vmul.f32 %v3193_v44, %v2979_v38  ;;  %v961_v55 = vsel %vm278_vm0, %v2988_v14, 0.0  ;;  %v962_v28 = vsel %vm278_vm0, %v3060_v42, 0.0  ;;  %v964_v13 = vsel %vm278_vm0, %v3131_v62, 0.0 }
  0xaf   : > { %4489 = vst [vmem:[#allocation101_spill] sm:$0xff] %v3363_v34  ;;  %v3375_v49 = vpop.eup %1757  ;;  %v3379_v61 = vmul.f32 %v3201_v60, %v2979_v38  ;;  %v3383_v34 = vmul.f32 %v3209_v59, %v2979_v38  ;;  %v3387_v44 = vmul.f32 %v3217_v26, %v2979_v38  ;;  %v963_v14 = vadd.f32 %v962_v28, %v961_v55  ;;  %v4492_v60 = vld [vmem:[#allocation8_spill] sm:$0xff] }
  0xb0   : > { %4490 = vst [vmem:[#allocation102_spill] sm:$0xff] %v3375_v49  ;;  %v3389_v0 = vpop.eup %1759  ;;  %v966_v42 = vsel %vm278_vm0, %v3179_v52, 0.0  ;;  %v968_v62 = vsel %vm278_vm0, %v921_v25, 0.0  ;;  %v970_v49 = vsel %vm278_vm0, %v929_v4, 0.0  ;;  %v978_v57 = vsel %vm278_vm0, %v4492_v60, 0.0 }
  0xb1   : > { %4491 = vst [vmem:[#allocation103_spill] sm:$0xff] %v3389_v0  ;;  %v965_v19 = vadd.f32 %v964_v13, %v963_v14  ;;  %v972_v59 = vsel %vm278_vm0, %v937_v45, 0.0  ;;  %v979_v38 = vsel %vm278_vm0, %v3069_v21, 0.0  ;;  %v981_v55 = vsel %vm278_vm0, %v3135_v50, 0.0  ;;  %v4493_v45 = vld [vmem:[#allocation9_spill] sm:$0xff] }
  0xb2   : > { %v974_v28 = vsel %vm278_vm0, %v945_v30, 0.0  ;;  %v976_v52 = vsel %vm278_vm0, %v953_v63, 0.0  ;;  %v980_v0 = vadd.f32 %v979_v38, %v978_v57  ;;  %v983_v4 = vsel %vm278_vm0, %v3187_v47, 0.0 }
  0xb3   : > { %v967_v25 = vadd.f32 %v966_v42, %v965_v19  ;;  %v985_v13 = vsel %vm278_vm0, %v3235_v16, 0.0  ;;  %v987_v60 = vsel %vm278_vm0, %v930_v2, 0.0  ;;  %v995_v21 = vsel %vm278_vm0, %v4493_v45, 0.0  ;;  %v4494_v2 = vld [vmem:[#allocation91_spill] sm:$0xff]  ;;  %v4495_v45 = vld [vmem:[#allocation66_spill] sm:$0xff] }
  0xb4   : > { %v982_v14 = vadd.f32 %v981_v55, %v980_v0  ;;  %v989_v50 = vsel %vm278_vm0, %v938_v53, 0.0  ;;  %v996_v30 = vsel %vm278_vm0, %v3078_v8, 0.0  ;;  %v998_v63 = vsel %vm278_vm0, %v3143_v36, 0.0 }
  0xb5   : > { %v969_v57 = vadd.f32 %v968_v62, %v967_v25  ;;  %v991_v47 = vsel %vm278_vm0, %v946_v39, 0.0  ;;  %v993_v19 = vsel %vm278_vm0, %v954_v32, 0.0  ;;  %v997_v16 = vadd.f32 %v996_v30, %v995_v21  ;;  %v4496_v62 = vld [vmem:[#allocation75_spill] sm:$0xff]  ;;  %v4497_v21 = vld [vmem:[#allocation82_spill] sm:$0xff] }
  0xb6   : > { %v984_v42 = vadd.f32 %v983_v4, %v982_v14  ;;  %v1000_v38 = vsel %vm278_vm0, %v4494_v2, 0.0  ;;  %v1002_v0 = vsel %vm278_vm0, %v3239_v58, 0.0  ;;  %v1004_v53 = vsel %vm278_vm0, %v3267_v1, 0.0 }
  0xb7   : > { %v971_v8 = vadd.f32 %v970_v49, %v969_v57  ;;  %v999_v55 = vadd.f32 %v998_v63, %v997_v16  ;;  %v1012_v36 = vsel %vm278_vm0, %v4495_v45, 0.0  ;;  %v1013_v39 = vsel %vm278_vm0, %v4496_v62, 0.0  ;;  %v4498_v49 = vld [vmem:[#allocation93_spill] sm:$0xff] }
  0xb8   : > { %v986_v32 = vadd.f32 %v985_v13, %v984_v42  ;;  %v1006_v4 = vsel %vm278_vm0, %v3297_v27, 0.0  ;;  %v1014_v25 = vadd.f32 %v1013_v39, %v1012_v36  ;;  %v1015_v14 = vsel %vm278_vm0, %v4497_v21, 0.0  ;;  %v4499_v36 = vld [vmem:[#allocation11_spill] sm:$0xff] }
  0xb9   : > { %v973_v58 = vadd.f32 %v972_v59, %v971_v8  ;;  %v1001_v30 = vadd.f32 %v1000_v38, %v999_v55  ;;  %v1008_v1 = vsel %vm278_vm0, %v947_v20, 0.0  ;;  %v1017_v63 = vsel %vm278_vm0, %v4498_v49, 0.0  ;;  %v4500_v8 = vld [vmem:[#allocation16_spill] sm:$0xff] }
  0xba   : > { %v988_v57 = vadd.f32 %v987_v60, %v986_v32  ;;  %v1010_v16 = vsel %vm278_vm0, %v955_v6, 0.0  ;;  %v1016_v2 = vadd.f32 %v1015_v14, %v1014_v25  ;;  %v1019_v13 = vsel %vm278_vm0, %v3243_v11, 0.0  ;;  %v4501_v60 = vld [vmem:[#allocation84_spill] sm:$0xff]  ;;  %v4502_v32 = vld [vmem:[#allocation95_spill] sm:$0xff] }
  0xbb   : > { %v975_v42 = vadd.f32 %v974_v28, %v973_v58  ;;  %v1003_v27 = vadd.f32 %v1002_v0, %v1001_v30  ;;  %v1021_v45 = vsel %vm278_vm0, %v3271_v54, 0.0  ;;  %v1029_v59 = vsel %vm278_vm0, %v4499_v36, 0.0  ;;  %v4503_v30 = vld [vmem:[#allocation31_spill] sm:$0xff] }
  0xbc   : > { %v990_v38 = vadd.f32 %v989_v50, %v988_v57  ;;  %v1018_v20 = vadd.f32 %v1017_v63, %v1016_v2  ;;  %v1030_v55 = vsel %vm278_vm0, %v4500_v8, 0.0  ;;  %v1032_v6 = vsel %vm278_vm0, %v4501_v60, 0.0  ;;  %v4504_v57 = vld [vmem:[#allocation42_spill] sm:$0xff]  ;;  %v4510_v60 = vld [vmem:[#allocation20_spill] sm:$0xff] }
  0xbd   : > { %v1005_v62 = vadd.f32 %v1004_v53, %v1003_v27  ;;  %v1023_v11 = vsel %vm278_vm0, %v3301_v46, 0.0  ;;  %v1025_v28 = vsel %vm278_vm0, %v3331_v23, 0.0  ;;  %v1031_v0 = vadd.f32 %v1030_v55, %v1029_v59 }
  0xbe   : > { %v992_v54 = vadd.f32 %v991_v47, %v990_v38  ;;  %v1020_v39 = vadd.f32 %v1019_v13, %v1018_v20  ;;  %v1027_v50 = vsel %vm278_vm0, %v3361_v12, 0.0  ;;  %v1034_v25 = vsel %vm278_vm0, %v4502_v32, 0.0 }
  0xbf   : > { %v3454_v21 = vadd.f32 %v976_v52, %v975_v42  ;;  %v1007_v14 = vadd.f32 %v1006_v4, %v1005_v62  ;;  %v1033_v58 = vadd.f32 %v1032_v6, %v1031_v0  ;;  %v1036_v53 = vsel %vm278_vm0, %v3247_v24, 0.0  ;;  %v4505_v4 = vld [vmem:[#allocation85_spill] sm:$0xff]  ;;  %v4511_v6 = vld [vmem:[#allocation87_spill] sm:$0xff] }
  0xc0   : > { %v1022_v46 = vadd.f32 %v1021_v45, %v1020_v39  ;;  %v1038_v23 = vsel %vm278_vm0, %v3275_v51, 0.0  ;;  %v1040_v47 = vsel %vm278_vm0, %v3307_v37, 0.0  ;;  %v1046_v12 = vsel %vm278_vm0, %v4503_v30, 0.0  ;;  %v4507_v45 = vld [vmem:[#allocation97_spill] sm:$0xff] }
  0xc1   : > { %v1009_v49 = vadd.f32 %v1008_v1, %v1007_v14  ;;  %v1035_v63 = vadd.f32 %v1034_v25, %v1033_v58  ;;  %v1047_v52 = vsel %vm278_vm0, %v4504_v57, 0.0  ;;  %v1049_v2 = vsel %vm278_vm0, %v4505_v4, 0.0 }
  0xc2   : > { %v3468_v13 = vadd.f32 %v993_v19, %v992_v54  ;;  %v1024_v24 = vadd.f32 %v1023_v11, %v1022_v46  ;;  %v1042_v51 = vsel %vm278_vm0, %v3337_v31, 0.0  ;;  %v1048_v42 = vadd.f32 %v1047_v52, %v1046_v12  ;;  %v4509_v31 = vld [vmem:[#allocation41_spill] sm:$0xff] }
  0xc3   : > { %v1037_v27 = vadd.f32 %v1036_v53, %v1035_v63  ;;  %v1044_v37 = vsel %vm278_vm0, %v3367_v7, 0.0  ;;  %v1051_v1 = vsel %vm278_vm0, %v4507_v45, 0.0  ;;  %v1053_v36 = vsel %vm278_vm0, %v3251_v41, 0.0  ;;  %v4514_v53 = vld [vmem:[#allocation22_spill] sm:$0xff] }
  0xc4   : > { %4506 = vst [vmem:[#allocation8_spill] sm:$0xff] %v3468_v13  ;;  %v3478_v59 = vadd.f32 %v1010_v16, %v1009_v49  ;;  %v1026_v38 = vadd.f32 %v1025_v28, %v1024_v24  ;;  %v1050_v19 = vadd.f32 %v1049_v2, %v1048_v42  ;;  %v1055_v20 = vsel %vm278_vm0, %v3279_v29, 0.0 }
  0xc5   : > { %v1039_v8 = vadd.f32 %v1038_v23, %v1037_v27  ;;  %v1063_v55 = vsel %vm278_vm0, %v4509_v31, 0.0  ;;  %v1064_v7 = vsel %vm278_vm0, %v4510_v60, 0.0  ;;  %v1066_v62 = vsel %vm278_vm0, %v4511_v6, 0.0  ;;  %v4515_v23 = vld [vmem:[#allocation88_spill] sm:$0xff] }
  0xc6   : > { %4508 = vst [vmem:[#allocation9_spill] sm:$0xff] %v3478_v59  ;;  %v1052_v11 = vadd.f32 %v1051_v1, %v1050_v19  ;;  %v1057_v41 = vsel %vm278_vm0, %v3311_v56, 0.0  ;;  %v1059_v16 = vsel %vm278_vm0, %v3341_v22, 0.0  ;;  %v1065_v29 = vadd.f32 %v1064_v7, %v1063_v55  ;;  %v4513_v22 = vld [vmem:[#allocation14_spill] sm:$0xff] }
  0xc7   : > { %v3492_v28 = vadd.f32 %v1027_v50, %v1026_v38  ;;  %v1041_v0 = vadd.f32 %v1040_v47, %v1039_v8  ;;  %v1061_v54 = vsel %vm278_vm0, %v3379_v61, 0.0  ;;  %v1068_v39 = vsel %vm278_vm0, %v3223_v5, 0.0  ;;  %v1560_v5 = vld.sshfl [vmem:[%s1828_s17 + $0x18] sm:$0x1 pattern:$0x75316420] }
  0xc8   : > { %v1054_v32 = vadd.f32 %v1053_v36, %v1052_v11  ;;  %v1067_v25 = vadd.f32 %v1066_v62, %v1065_v29  ;;  %v1070_v14 = vsel %vm278_vm0, %v3255_v3, 0.0  ;;  %v1072_v56 = vsel %vm278_vm0, %v3283_v9, 0.0 }
  0xc9   : > { %4512 = vst [vmem:[#allocation91_spill] sm:$0xff] %v3492_v28  ;;  %v1043_v58 = vadd.f32 %v1042_v51, %v1041_v0  ;;  %v1080_v50 = vsel %vm278_vm0, %v4513_v22, 0.0  ;;  %v1081_v46 = vsel %vm278_vm0, %v4514_v53, 0.0  ;;  %v1083_v61 = vsel %vm278_vm0, %v4515_v23, 0.0  ;;  %v4518_v51 = vld [vmem:[#allocation58_spill] sm:$0xff] }
  0xca   : > { %v1056_v47 = vadd.f32 %v1055_v20, %v1054_v32  ;;  %v1069_v30 = vadd.f32 %v1068_v39, %v1067_v25  ;;  %v1074_v3 = vsel %vm278_vm0, %v3315_v43, 0.0  ;;  %v1082_v12 = vadd.f32 %v1081_v46, %v1080_v50  ;;  %v4523_v46 = vld [vmem:[#allocation6_spill] sm:$0xff] }
  0xcb   : > { %v3512_v49 = vadd.f32 %v1044_v37, %v1043_v58  ;;  %v1076_v9 = vsel %vm278_vm0, %v3345_v18, 0.0  ;;  %v1078_v63 = vsel %vm278_vm0, %v3383_v34, 0.0  ;;  %v1085_v57 = vsel %vm278_vm0, %v3229_v33, 0.0  ;;  %v4517_v18 = vld [vmem:[#allocation3_spill] sm:$0xff] }
  0xcc   : > { %v1058_v52 = vadd.f32 %v1057_v41, %v1056_v47  ;;  %v1071_v4 = vadd.f32 %v1070_v14, %v1069_v30  ;;  %v1084_v2 = vadd.f32 %v1083_v61, %v1082_v12  ;;  %v1087_v24 = vsel %vm278_vm0, %v3259_v40, 0.0  ;;  %v4524_v61 = vld [vmem:[#allocation25_spill] sm:$0xff]  ;;  %v4525_v47 = vld [vmem:[#allocation18_spill] sm:$0xff] }
  0xcd   : > { %4516 = vst [vmem:[#allocation66_spill] sm:$0xff] %v3512_v49  ;;  %v1089_v43 = vsel %vm278_vm0, %v3287_v15, 0.0  ;;  %v1106_v34 = vrot.slane %v4518_v51, %v4517_v18  ;;  %v4519_v33 = vcombine.high %v4518_v51, %v4518_v51  ;;  %v1161_v27 = vrot.slane %v1560_v5, %v4517_v18  ;;  %v4533_v51 = vld [vmem:[#allocation7_spill] sm:$0xff] }
  0xce   : > { %v1060_v40 = vadd.f32 %v1059_v16, %v1058_v52  ;;  %v1073_v37 = vadd.f32 %v1072_v56, %v1071_v4  ;;  %v1086_v45 = vadd.f32 %v1085_v57, %v1084_v2  ;;  %v1415_v1 = vmul.f32 %v3289_v10, %v3454_v21  ;;  %v4520_v16 = vld [vmem:[#allocation2_spill] sm:$0xff]  ;;  %v4528_v57 = vld [vmem:[#allocation23_spill] sm:$0xff]  ;;  %v4530_v2 = vld [vmem:[#allocation12_spill] sm:$0xff] }
  0xcf   : > { %v1113_v42 = vrot.slane %v4519_v33, %v4517_v18  ;;  %v1114_v36 = vcombine.high %v1106_v34, %v1106_v34  ;;  %v1122_v15 = vrot.slane %v1106_v34, %v4517_v18  ;;  %v1091_v31 = vsel %vm278_vm0, %v3319_v17, 0.0  ;;  %v4534_v33 = vld [vmem:[#allocation10_spill] sm:$0xff] }
  0xd0   : > { %v1075_v20 = vadd.f32 %v1074_v3, %v1073_v37  ;;  %v1088_v8 = vadd.f32 %v1087_v24, %v1086_v45  ;;  %v1093_v55 = vsel %vm278_vm0, %v3349_v35, 0.0  ;;  %1423 = vst.msk [vmem:[%s3525_s24] sm:$0xff] %vm278_vm0, %v1415_v1  ;;  %v1095_v41 = vsel %vm278_vm0, %v3387_v44, 0.0  ;;  %v4526_v3 = vld [vmem:[#allocation33_spill] sm:$0xff]  ;;  %v4536_v37 = vld [vmem:[#allocation15_spill] sm:$0xff]  ;;  %v4537_v1 = vld [vmem:[#allocation32_spill] sm:$0xff] }
  0xd1   : > { %v1115_v38 = vcombine.high %v1113_v42, %v1113_v42  ;;  %v1129_v19 = vrot.slane %v1113_v42, %v4517_v18  ;;  %v1136_v60 = vrot.slane %v1114_v36, %v4517_v18  ;;  %v1144_v7 = vcombine.high %v1122_v15, %v1122_v15 }
  0xd2   : > { %v1077_v62 = vadd.f32 %v1076_v9, %v1075_v20  ;;  %v1090_v11 = vadd.f32 %v1089_v43, %v1088_v8  ;;  %v1165_v29 = vrot.slane %v1122_v15, %v4520_v16  ;;  %v3551_v0 = vadd.f32 %v1061_v54, %v1060_v40  ;;  %v4527_v9 = vld [vmem:[#allocation34_spill] sm:$0xff]  ;;  %v4531_v43 = vld [vmem:[#allocation47_spill] sm:$0xff]  ;;  %v4541_v8 = vld [vmem:[#allocation24_spill] sm:$0xff] }
  0xd3   : > { %v1143_v21 = vrot.slane %v1115_v38, %v4517_v18  ;;  %v1145_v6 = vcombine.high %v1129_v19, %v1129_v19  ;;  %v1146_v17 = vcombine.high %v1136_v60, %v1136_v60  ;;  %v3554_v35 = vrot.slane %v1161_v27, %v4520_v16  ;;  %v4535_v27 = vld [vmem:[#allocation13_spill] sm:$0xff]  ;;  %v4538_v38 = vld [vmem:[#allocation46_spill] sm:$0xff] }
  0xd4   : > { %4521 = vst [vmem:[#allocation75_spill] sm:$0xff] %v3551_v0  ;;  %v1092_v32 = vadd.f32 %v1091_v31, %v1090_v11  ;;  %v1169_v25 = vrot.slane %v1136_v60, %v4520_v16  ;;  %v1173_v14 = vrot.slane %v1144_v7, %v4520_v16  ;;  %v1181_v56 = vrot.slane %v1129_v19, %v4520_v16  ;;  %v4539_v19 = vld [vmem:[#allocation21_spill] sm:$0xff]  ;;  %v4546_v11 = vld [vmem:[#allocation27_spill] sm:$0xff] }
  0xd5   : > { %v1147_v39 = vcombine.high %v1143_v21, %v1143_v21  ;;  %v3559_v58 = vadd.f32 %v1078_v63, %v1077_v62  ;;  %v1177_v44 = vrot.slane %v1146_v17, %v4520_v16  ;;  %v1185_v22 = vrot.slane %v1143_v21, %v4520_v16  ;;  %v4544_v21 = vld [vmem:[#allocation44_spill] sm:$0xff]  ;;  %v4548_v17 = vld [vmem:[#allocation29_spill] sm:$0xff] }
  0xd6   : > { %v1189_v54 = vrot.slane %v1145_v6, %v4520_v16  ;;  %v1094_v50 = vadd.f32 %v1093_v55, %v1092_v32  ;;  %v3568_v23 = vmul.f32 %v4523_v46, %v1165_v29  ;;  %v3571_v5 = vmul.f32 %v4524_v61, %v1165_v29  ;;  %v4543_v55 = vld [vmem:[#allocation35_spill] sm:$0xff]  ;;  %v4545_v6 = vld [vmem:[#allocation26_spill] sm:$0xff]  ;;  %v4553_v61 = vld [vmem:[#allocation48_spill] sm:$0xff] }
  0xd7   : > { %4522 = vst [vmem:[#allocation82_spill] sm:$0xff] %v3559_v58  ;;  %v3565_v53 = vrot.slane %v1147_v39, %v4520_v16  ;;  %v3574_v30 = vmul.f32 %v4525_v47, %v1165_v29  ;;  %v3577_v12 = vmul.f32 %v4526_v3, %v1165_v29  ;;  %v3580_v63 = vmul.f32 %v4527_v9, %v1165_v29  ;;  %v4547_v16 = vld [vmem:[#allocation28_spill] sm:$0xff]  ;;  %v4549_v32 = vld [vmem:[#allocation30_spill] sm:$0xff]  ;;  %v4554_v3 = vld [vmem:[#allocation49_spill] sm:$0xff] }
  0xd8   : > { %v3583_v52 = vmul.f32 %v4528_v57, %v1165_v29  ;;  %v3585_v4 = vadd.f32 %v1095_v41, %v1094_v50  ;;  %v3588_v24 = vmul.f32 %v4530_v2, %v1165_v29  ;;  %v3591_v18 = vmul.f32 %v4531_v43, %v1165_v29  ;;  %v4551_v50 = vld [vmem:[#allocation38_spill] sm:$0xff]  ;;  %v4556_v43 = vld [vmem:[#allocation17_spill] sm:$0xff] }
  0xd9   : > { %v3594_v34 = vmul.f32 %v4533_v51, %v1169_v25  ;;  %v3597_v42 = vmul.f32 %v4534_v33, %v1169_v25  ;;  %v3600_v40 = vmul.f32 %v4535_v27, %v1169_v25  ;;  %v3603_v45 = vmul.f32 %v4536_v37, %v1169_v25  ;;  %v4555_v57 = vld [vmem:[#allocation50_spill] sm:$0xff]  ;;  %v4557_v33 = vld [vmem:[#allocation51_spill] sm:$0xff]  ;;  %v4558_v37 = vld [vmem:[#allocation52_spill] sm:$0xff] }
  0xda   : > { %4529 = vst [vmem:[#allocation93_spill] sm:$0xff] %v3585_v4  ;;  %4532 = vst [vmem:[#allocation11_spill] sm:$0xff] %v3591_v18  ;;  %v3606_v36 = vmul.f32 %v4537_v1, %v1169_v25  ;;  %v3609_v15 = vmul.f32 %v4538_v38, %v1169_v25  ;;  %v3612_v20 = vmul.f32 %v4539_v19, %v1169_v25 }
  0xdb   : > { %v3615_v31 = vmul.f32 %v4541_v8, %v1169_v25  ;;  %v1223_v60 = vmul.f32 %v4543_v55, %v1173_v14  ;;  %v3619_v7 = vmul.f32 %v4544_v21, %v1173_v14  ;;  %v3622_v62 = vmul.f32 %v4545_v6, %v1173_v14  ;;  %v4562_v8 = vld [vmem:[#allocation54_spill] sm:$0xff]  ;;  %v4563_v21 = vld [vmem:[#allocation55_spill] sm:$0xff] }
  0xdc   : > { %4540 = vst [vmem:[#allocation16_spill] sm:$0xff] %v3612_v20  ;;  %v3625_v41 = vmul.f32 %v4546_v11, %v1173_v14  ;;  %v3628_v29 = vmul.f32 %v4547_v16, %v1173_v14  ;;  %v3631_v39 = vmul.f32 %v4548_v17, %v1173_v14  ;;  %v3634_v25 = vmul.f32 %v4549_v32, %v1173_v14  ;;  %v4564_v11 = vld [vmem:[#allocation56_spill] sm:$0xff]  ;;  %v4565_v17 = vld [vmem:[#allocation57_spill] sm:$0xff] }
  0xdd   : > { %4542 = vst [vmem:[#allocation84_spill] sm:$0xff] %v3615_v31  ;;  %v3637_v46 = vmul.f32 %v4551_v50, %v1173_v14  ;;  %v1231_v47 = vmul.f32 %v4553_v61, %v1177_v44  ;;  %v1232_v9 = vmul.f32 %v4554_v3, %v1177_v44  ;;  %v3642_v2 = vmul.f32 %v4555_v57, %v1177_v44  ;;  %v4560_v14 = vld [vmem:[#allocation5_spill] sm:$0xff]  ;;  %v4566_v50 = vld [vmem:[#allocation59_spill] sm:$0xff]  ;;  %v4567_v3 = vld [vmem:[#allocation60_spill] sm:$0xff] }
  0xde   : > { %4550 = vst [vmem:[#allocation95_spill] sm:$0xff] %v3634_v25  ;;  %v3645_v51 = vmul.f32 %v4556_v43, %v1177_v44  ;;  %v3648_v27 = vmul.f32 %v4557_v33, %v1177_v44  ;;  %v3651_v1 = vmul.f32 %v4558_v37, %v1177_v44  ;;  %v3654_v38 = vmul.f32 %v4476_v48, %v1177_v44  ;;  %v4568_v48 = vld [vmem:[#allocation37_spill] sm:$0xff]  ;;  %v4572_v37 = vld [vmem:[#allocation36_spill] sm:$0xff] }
  0xdf   : > { %4552 = vst [vmem:[#allocation31_spill] sm:$0xff] %v3637_v46  ;;  %v3657_v19 = vmul.f32 %v4560_v14, %v1177_v44  ;;  %v1239_v55 = vmul.f32 %v4562_v8, %v1181_v56  ;;  %v1240_v6 = vmul.f32 %v4563_v21, %v1181_v56  ;;  %v3662_v16 = vmul.f32 %v4564_v11, %v1181_v56  ;;  %v4570_v44 = vld [vmem:[#allocation40_spill] sm:$0xff]  ;;  %v4573_v8 = vld [vmem:[#allocation39_spill] sm:$0xff] }
  0xe0   : > { %4559 = vst [vmem:[#allocation42_spill] sm:$0xff] %v3654_v38  ;;  %v3665_v32 = vmul.f32 %v4565_v17, %v1181_v56  ;;  %v3668_v61 = vmul.f32 %v4566_v50, %v1181_v56  ;;  %v3671_v57 = vmul.f32 %v4567_v3, %v1181_v56  ;;  %v3674_v43 = vmul.f32 %v4568_v48, %v1181_v56  ;;  %v4574_v11 = vld [vmem:[#allocation19_spill] sm:$0xff]  ;;  %v4575_v17 = vld [vmem:[#allocation61_spill] sm:$0xff]  ;;  %v4576_v50 = vld [vmem:[#allocation62_spill] sm:$0xff] }
  0xe1   : > { %4561 = vst [vmem:[#allocation85_spill] sm:$0xff] %v3657_v19  ;;  %v3677_v33 = vmul.f32 %v4570_v44, %v1181_v56  ;;  %v1247_v14 = vmul.f32 %v4572_v37, %v1185_v22  ;;  %v1248_v21 = vmul.f32 %v4573_v8, %v1185_v22  ;;  %v1249_v10 = vmul.f32 %v4574_v11, %v1185_v22  ;;  %v4577_v3 = vld [vmem:[#allocation4_spill] sm:$0xff]  ;;  %v4578_v48 = vld [vmem:[#allocation43_spill] sm:$0xff]  ;;  %v4583_v8 = vld [vmem:[#allocation65_spill] sm:$0xff] }
  0xe2   : > { %4569 = vst [vmem:[#allocation97_spill] sm:$0xff] %v3674_v43  ;;  %v3683_v4 = vmul.f32 %v4575_v17, %v1185_v22  ;;  %v3686_v58 = vmul.f32 %v4576_v50, %v1185_v22  ;;  %v3689_v0 = vmul.f32 %v4577_v3, %v1185_v22  ;;  %v3692_v49 = vmul.f32 %v4578_v48, %v1185_v22  ;;  %v4580_v56 = vld [vmem:[#allocation63_spill] sm:$0xff]  ;;  %v4582_v37 = vld [vmem:[#allocation64_spill] sm:$0xff]  ;;  %v4586_v50 = vld [vmem:[#allocation69_spill] sm:$0xff] }
  0xe3   : > { %4571 = vst [vmem:[#allocation41_spill] sm:$0xff] %v3677_v33  ;;  %v3695_v44 = vmul.f32 %v4580_v56, %v1185_v22  ;;  %v1255_v28 = vmul.f32 %v4582_v37, %v1189_v54  ;;  %v1256_v59 = vmul.f32 %v4583_v8, %v1189_v54  ;;  %v4584_v11 = vld [vmem:[#allocation67_spill] sm:$0xff]  ;;  %v4585_v17 = vld [vmem:[#allocation68_spill] sm:$0xff]  ;;  %v3704_v19 = vmul.f32 %v4586_v50, %v1189_v54  ;;  %v4587_v3 = vld [vmem:[#allocation70_spill] sm:$0xff] }
  0xe4   : > { %4579 = vst [vmem:[#allocation20_spill] sm:$0xff] %v3692_v49  ;;  %v1257_v13 = vmul.f32 %v4584_v11, %v1189_v54  ;;  %v3701_v33 = vmul.f32 %v4585_v17, %v1189_v54  ;;  %v3707_v46 = vmul.f32 %v4587_v3, %v1189_v54  ;;  %v4589_v48 = vld [vmem:[#allocation71_spill] sm:$0xff]  ;;  %v4591_v22 = vld [vmem:[#allocation72_spill] sm:$0xff]  ;;  %v4593_v37 = vld [vmem:[#allocation73_spill] sm:$0xff]  ;;  %v1279_v25 = vsel %vm278_vm0, %v3568_v23, 0.0 }
  0xe5   : > { %4581 = vst [vmem:[#allocation87_spill] sm:$0xff] %v3695_v44  ;;  %v3710_v31 = vmul.f32 %v4589_v48, %v1189_v54  ;;  %v3713_v56 = vmul.f32 %v4591_v22, %v1189_v54  ;;  %v1263_v8 = vmul.f32 %v4593_v37, %v3565_v53  ;;  %v4594_v11 = vld [vmem:[#allocation74_spill] sm:$0xff]  ;;  %v4595_v17 = vld [vmem:[#allocation76_spill] sm:$0xff]  ;;  %v4596_v50 = vld [vmem:[#allocation77_spill] sm:$0xff]  ;;  %v1288_v23 = vsel %vm278_vm0, %v1247_v14, 0.0 }
  0xe6   : > { %4588 = vst [vmem:[#allocation14_spill] sm:$0xff] %v3707_v46  ;;  %v1264_v44 = vmul.f32 %v4594_v11, %v3565_v53  ;;  %v1265_v18 = vmul.f32 %v4595_v17, %v3565_v53  ;;  %v3723_v49 = vmul.f32 %v4596_v50, %v3565_v53  ;;  %v4597_v3 = vld [vmem:[#allocation78_spill] sm:$0xff]  ;;  %v4598_v54 = vld [vmem:[#allocation79_spill] sm:$0xff]  ;;  %v4601_v11 = vld [vmem:[#allocation89_spill] sm:$0xff]  ;;  %v1303_v14 = vsel %vm278_vm0, %v1240_v6, 0.0 }
  0xe7   : > { %4590 = vst [vmem:[#allocation22_spill] sm:$0xff] %v3710_v31  ;;  %4592 = vst [vmem:[#allocation88_spill] sm:$0xff] %v3713_v56  ;;  %v3727_v48 = vmul.f32 %v4597_v3, %v3565_v53  ;;  %v3731_v22 = vmul.f32 %v4598_v54, %v3565_v53  ;;  %v4600_v37 = vld [vmem:[#allocation86_spill] sm:$0xff]  ;;  %v1273_v31 = vmul.f32 %v4601_v11, %v3554_v35  ;;  %v4603_v50 = vld [vmem:[#allocation92_spill] sm:$0xff] }
  0xe8   : > { %v1272_v56 = vmul.f32 %v4600_v37, %v3554_v35  ;;  %v4602_v17 = vld [vmem:[#allocation90_spill] sm:$0xff]  ;;  %v3743_v38 = vmul.f32 %v4603_v50, %v3554_v35  ;;  %v4606_v54 = vld [vmem:[#allocation96_spill] sm:$0xff]  ;;  %v3755_v37 = vmul.f32 %v3217_v26, %v3554_v35  ;;  %v4609_v11 = vld [vmem:[#allocation83_spill] sm:$0xff]  ;;  %v1280_v50 = vsel %vm278_vm0, %v3594_v34, 0.0 }
  0xe9   : > { %4599 = vst [vmem:[#allocation3_spill] sm:$0xff] %v3731_v22  ;;  %v3739_v43 = vmul.f32 %v4602_v17, %v3554_v35  ;;  %v4604_v3 = vld [vmem:[#allocation94_spill] sm:$0xff]  ;;  %v3751_v22 = vmul.f32 %v4606_v54, %v3554_v35  ;;  %v1271_v17 = vmul.f32 %v4609_v11, %v3554_v35  ;;  %v4612_v54 = vld [vmem:[#allocation81_spill] sm:$0xff]  ;;  %v1281_v26 = vadd.f32 %v1280_v50, %v1279_v25 }
  0xea   : > { %v3747_v46 = vmul.f32 %v4604_v3, %v3554_v35  ;;  %4608 = vst [vmem:[#allocation6_spill] sm:$0xff] %v3755_v37  ;;  %v1282_v3 = vsel %vm278_vm0, %v1223_v60, 0.0  ;;  %v1284_v37 = vsel %vm278_vm0, %v1231_v47, 0.0  ;;  %v1286_v35 = vsel %vm278_vm0, %v1239_v55, 0.0 }
  0xeb   : > { %4607 = vst [vmem:[#allocation2_spill] sm:$0xff] %v3751_v22  ;;  %v3770_v22 = vmul.f32 %v4612_v54, %v3565_v53  ;;  %v1296_v34 = vsel %vm278_vm0, %v3571_v5, 0.0  ;;  %v1297_v60 = vsel %vm278_vm0, %v3597_v42, 0.0  ;;  %v1283_v11 = vadd.f32 %v1282_v3, %v1281_v26 }
  0xec   : > { %4605 = vst [vmem:[#allocation58_spill] sm:$0xff] %v3747_v46  ;;  %v4610_v46 = vld [vmem:[#allocation80_spill] sm:$0xff]  ;;  %v1292_v25 = vsel %vm278_vm0, %v1263_v8, 0.0  ;;  %v1294_v47 = vsel %vm278_vm0, %v1271_v17, 0.0  ;;  %v1301_v55 = vsel %vm278_vm0, %v1232_v9, 0.0  ;;  %v1305_v54 = vsel %vm278_vm0, %v1248_v21, 0.0 }
  0xed   : > { %v3766_v20 = vmul.f32 %v4610_v46, %v3565_v53  ;;  %v1290_v46 = vsel %vm278_vm0, %v1255_v28, 0.0  ;;  %v1299_v53 = vsel %vm278_vm0, %v3619_v7, 0.0  ;;  %v1285_v50 = vadd.f32 %v1284_v37, %v1283_v11 }
  0xee   : > { %v1313_v42 = vsel %vm278_vm0, %v3574_v30, 0.0  ;;  %v1307_v28 = vsel %vm278_vm0, %v1256_v59, 0.0  ;;  %v1309_v3 = vsel %vm278_vm0, %v1264_v44, 0.0  ;;  %v1314_v7 = vsel %vm278_vm0, %v3600_v40, 0.0 }
  0xef   : > { %4611 = vst [vmem:[#allocation25_spill] sm:$0xff] %v3766_v20  ;;  %v1298_v20 = vadd.f32 %v1297_v60, %v1296_v34  ;;  %v1316_v8 = vsel %vm278_vm0, %v3622_v62, 0.0  ;;  %v1287_v9 = vadd.f32 %v1286_v35, %v1285_v50  ;;  %v1311_v6 = vsel %vm278_vm0, %v1272_v56, 0.0 }
  0xf0   : > { %v1318_v21 = vsel %vm278_vm0, %v3642_v2, 0.0  ;;  %v1320_v30 = vsel %vm278_vm0, %v3662_v16, 0.0  ;;  %v1322_v59 = vsel %vm278_vm0, %v1249_v10, 0.0  ;;  %v1330_v44 = vsel %vm278_vm0, %v3577_v12, 0.0 }
  0xf1   : > { %v1300_v5 = vadd.f32 %v1299_v53, %v1298_v20  ;;  %v1315_v20 = vadd.f32 %v1314_v7, %v1313_v42  ;;  %v1289_v40 = vadd.f32 %v1288_v23, %v1287_v9  ;;  %v1331_v62 = vsel %vm278_vm0, %v3603_v45, 0.0 }
  0xf2   : > { %v1324_v56 = vsel %vm278_vm0, %v1257_v13, 0.0  ;;  %v1326_v35 = vsel %vm278_vm0, %v1265_v18, 0.0  ;;  %v1332_v34 = vadd.f32 %v1331_v62, %v1330_v44  ;;  %v1333_v2 = vsel %vm278_vm0, %v3625_v41, 0.0  ;;  %v4615_v62 = vld [vmem:[#allocation14_spill] sm:$0xff] }
  0xf3   : > { %v1302_v17 = vadd.f32 %v1301_v55, %v1300_v5  ;;  %v1317_v26 = vadd.f32 %v1316_v8, %v1315_v20  ;;  %v1291_v16 = vadd.f32 %v1290_v46, %v1289_v40  ;;  %v1335_v12 = vsel %vm278_vm0, %v3645_v51, 0.0  ;;  %v4613_v40 = vld [vmem:[#allocation16_spill] sm:$0xff] }
  0xf4   : > { %v1328_v23 = vsel %vm278_vm0, %v1273_v31, 0.0  ;;  %v1334_v11 = vadd.f32 %v1333_v2, %v1332_v34  ;;  %v1337_v45 = vsel %vm278_vm0, %v3665_v32, 0.0  ;;  %v1339_v13 = vsel %vm278_vm0, %v3683_v4, 0.0 }
  0xf5   : > { %v1304_v37 = vadd.f32 %v1303_v14, %v1302_v17  ;;  %v1319_v10 = vadd.f32 %v1318_v21, %v1317_v26  ;;  %v1293_v18 = vadd.f32 %v1292_v25, %v1291_v16  ;;  %v1347_v41 = vsel %vm278_vm0, %v3580_v63, 0.0  ;;  %v4617_v16 = vld [vmem:[#allocation58_spill] sm:$0xff] }
  0xf6   : > { %v1336_v46 = vadd.f32 %v1335_v12, %v1334_v11  ;;  %v1341_v14 = vsel %vm278_vm0, %v3701_v33, 0.0  ;;  %v1348_v31 = vsel %vm278_vm0, %v3606_v36, 0.0  ;;  %v1350_v51 = vsel %vm278_vm0, %v3628_v29, 0.0 }
  0xf7   : > { %v1306_v60 = vadd.f32 %v1305_v54, %v1304_v37  ;;  %v1321_v55 = vadd.f32 %v1320_v30, %v1319_v10  ;;  %v1343_v4 = vsel %vm278_vm0, %v3723_v49, 0.0  ;;  %v1349_v25 = vadd.f32 %v1348_v31, %v1347_v41  ;;  %v4614_v37 = vld [vmem:[#allocation95_spill] sm:$0xff] }
  0xf8   : > { %v3826_v5 = vadd.f32 %v1294_v47, %v1293_v18  ;;  %v1338_v54 = vadd.f32 %v1337_v45, %v1336_v46  ;;  %v1345_v63 = vsel %vm278_vm0, %v3739_v43, 0.0  ;;  %v1352_v33 = vsel %vm278_vm0, %v3648_v27, 0.0  ;;  %v4620_v45 = vld [vmem:[#allocation20_spill] sm:$0xff]  ;;  %v4621_v18 = vld [vmem:[#allocation11_spill] sm:$0xff] }
  0xf9   : > { %v1308_v53 = vadd.f32 %v1307_v28, %v1306_v60  ;;  %v1323_v50 = vadd.f32 %v1322_v59, %v1321_v55  ;;  %v1351_v28 = vadd.f32 %v1350_v51, %v1349_v25  ;;  %v1354_v29 = vsel %vm278_vm0, %v3668_v61, 0.0  ;;  %v4618_v60 = vld [vmem:[#allocation42_spill] sm:$0xff]  ;;  %v4622_v46 = vld [vmem:[#allocation84_spill] sm:$0xff]  ;;  %v4623_v31 = vld [vmem:[#allocation31_spill] sm:$0xff] }
  0xfa   : > { %v1356_v49 = vsel %vm278_vm0, %v3686_v58, 0.0  ;;  %v1364_v47 = vsel %vm278_vm0, %v3583_v52, 0.0  ;;  %v1365_v43 = vsel %vm278_vm0, %v3609_v15, 0.0  ;;  %v1367_v9 = vsel %vm278_vm0, %v3631_v39, 0.0  ;;  %v4625_v25 = vld [vmem:[#allocation25_spill] sm:$0xff] }
  0xfb   : > { %v1310_v32 = vadd.f32 %v1309_v3, %v1308_v53  ;;  %v1325_v36 = vadd.f32 %v1324_v56, %v1323_v50  ;;  %v1340_v3 = vadd.f32 %v1339_v13, %v1338_v54  ;;  %v1353_v8 = vadd.f32 %v1352_v33, %v1351_v28  ;;  %v4624_v50 = vld [vmem:[#allocation22_spill] sm:$0xff] }
  0xfc   : > { %v1366_v27 = vadd.f32 %v1365_v43, %v1364_v47  ;;  %v1358_v61 = vsel %vm278_vm0, %v3704_v19, 0.0  ;;  %v1369_v58 = vsel %vm278_vm0, %v3651_v1, 0.0  ;;  %v1362_v15 = vsel %vm278_vm0, %v3743_v38, 0.0  ;;  %v4626_v28 = vld [vmem:[#allocation2_spill] sm:$0xff] }
  0xfd   : > { %v3832_v42 = vadd.f32 %v1311_v6, %v1310_v32  ;;  %v1327_v7 = vadd.f32 %v1326_v35, %v1325_v36  ;;  %v1342_v17 = vadd.f32 %v1341_v14, %v1340_v3  ;;  %v1360_v6 = vsel %vm278_vm0, %v3727_v48, 0.0  ;;  %v4616_v35 = vld [vmem:[#allocation3_spill] sm:$0xff]  ;;  %v4627_v3 = vld [vmem:[#allocation85_spill] sm:$0xff] }
  0xfe   : > { %v1355_v20 = vadd.f32 %v1354_v29, %v1353_v8  ;;  %v1368_v21 = vadd.f32 %v1367_v9, %v1366_v27  ;;  %v1371_v39 = vsel %vm278_vm0, %v3671_v57, 0.0  ;;  %v1373_v59 = vsel %vm278_vm0, %v3689_v0, 0.0  ;;  %v4629_v27 = vld [vmem:[#allocation87_spill] sm:$0xff] }
  0xff   : > { %v1329_v52 = vadd.f32 %v1328_v23, %v1327_v7  ;;  %v1344_v30 = vadd.f32 %v1343_v4, %v1342_v17  ;;  %v1381_v19 = vsel %vm278_vm0, %v3588_v24, 0.0  ;;  %v1382_v1 = vsel %vm278_vm0, %v4613_v40, 0.0  ;;  %v4619_v23 = vld [vmem:[#allocation97_spill] sm:$0xff]  ;;  %v4637_v40 = vld [vmem:[#allocation100_spill] sm:$0xff] }
 0x100   : > { %v1357_v48 = vadd.f32 %v1356_v49, %v1355_v20  ;;  %v1370_v44 = vadd.f32 %v1369_v58, %v1368_v21  ;;  %v1384_v26 = vsel %vm278_vm0, %v4614_v37, 0.0  ;;  %v1375_v56 = vsel %vm278_vm0, %v4615_v62, 0.0  ;;  %v4628_v7 = vld [vmem:[#allocation41_spill] sm:$0xff]  ;;  %v4638_v37 = vld [vmem:[#allocation75_spill] sm:$0xff] }
 0x101   : > { %v1346_v38 = vadd.f32 %v1345_v63, %v1344_v30  ;;  %v1377_v57 = vsel %vm278_vm0, %v4616_v35, 0.0  ;;  %v1383_v34 = vadd.f32 %v1382_v1, %v1381_v19  ;;  %v1379_v24 = vsel %vm278_vm0, %v4617_v16, 0.0  ;;  %v4632_v20 = vld [vmem:[#allocation9_spill] sm:$0xff]  ;;  %v4634_v30 = vld [vmem:[#allocation91_spill] sm:$0xff]  ;;  %v4640_v35 = vld [vmem:[#allocation82_spill] sm:$0xff] }
 0x102   : > { %v1359_v0 = vadd.f32 %v1358_v61, %v1357_v48  ;;  %v1372_v2 = vadd.f32 %v1371_v39, %v1370_v44  ;;  %v1386_v10 = vsel %vm278_vm0, %v4618_v60, 0.0  ;;  %v1388_v11 = vsel %vm278_vm0, %v4619_v23, 0.0  ;;  %v4630_v61 = vld [vmem:[#allocation8_spill] sm:$0xff]  ;;  %v4635_v39 = vld [vmem:[#allocation99_spill] sm:$0xff]  ;;  %v4636_v44 = vld [vmem:[#allocation66_spill] sm:$0xff] }
 0x103   : > { %v1385_v12 = vadd.f32 %v1384_v26, %v1383_v34  ;;  %v1390_v13 = vsel %vm278_vm0, %v4620_v45, 0.0  ;;  %v1398_v53 = vsel %vm278_vm0, %v4621_v18, 0.0  ;;  %v1399_v14 = vsel %vm278_vm0, %v4622_v46, 0.0  ;;  %v4639_v26 = vld [vmem:[#allocation101_spill] sm:$0xff]  ;;  %v4645_v45 = vld [vmem:[#allocation88_spill] sm:$0xff]  ;;  %v4646_v46 = vld [vmem:[#allocation6_spill] sm:$0xff] }
 0x104   : > { %v1361_v55 = vadd.f32 %v1360_v6, %v1359_v0  ;;  %v1374_v41 = vadd.f32 %v1373_v59, %v1372_v2  ;;  %v1401_v51 = vsel %vm278_vm0, %v4623_v31, 0.0  ;;  %v1392_v4 = vsel %vm278_vm0, %v4624_v50, 0.0  ;;  %v4631_v6 = vld [vmem:[#allocation45_spill] sm:$0xff]  ;;  %v4643_v2 = vld [vmem:[#allocation103_spill] sm:$0xff] }
 0x105   : > { %v1387_v32 = vadd.f32 %v1386_v10, %v1385_v12  ;;  %v1394_v54 = vsel %vm278_vm0, %v4625_v25, 0.0  ;;  %v1400_v63 = vadd.f32 %v1399_v14, %v1398_v53  ;;  %v1396_v29 = vsel %vm278_vm0, %v4626_v28, 0.0  ;;  %v4642_v0 = vld [vmem:[#allocation93_spill] sm:$0xff] }
 0x106   : > { %v1363_v33 = vadd.f32 %v1362_v15, %v1361_v55  ;;  %v1376_v36 = vadd.f32 %v1375_v56, %v1374_v41  ;;  %v1403_v49 = vsel %vm278_vm0, %v4627_v3, 0.0  ;;  %v1405_v8 = vsel %vm278_vm0, %v4628_v7, 0.0  ;;  %v4633_v15 = vld [vmem:[#allocation98_spill] sm:$0xff]  ;;  %v4644_v60 = vld [vmem:[#allocation53_spill] sm:$0xff] }
 0x107   : > { %v1389_v47 = vadd.f32 %v1388_v11, %v1387_v32  ;;  %v1402_v43 = vadd.f32 %v1401_v51, %v1400_v63  ;;  %v1407_v9 = vsel %vm278_vm0, %v4629_v27, 0.0  ;;  %v1416_v58 = vmul.f32 %v4631_v6, %v4630_v61 }
 0x108   : > { %v1378_v17 = vadd.f32 %v1377_v57, %v1376_v36  ;;  %v1417_v21 = vmul.f32 %v4633_v15, %v4632_v20  ;;  %v1418_v59 = vmul.f32 %v4635_v39, %v4634_v30  ;;  %v1419_v1 = vmul.f32 %v4637_v40, %v4636_v44  ;;  %v4641_v57 = vld [vmem:[#allocation102_spill] sm:$0xff] }
 0x109   : > { %v1391_v19 = vadd.f32 %v1390_v13, %v1389_v47  ;;  %v1404_v48 = vadd.f32 %v1403_v49, %v1402_v43  ;;  %v1420_v62 = vmul.f32 %v4639_v26, %v4638_v37  ;;  %v1421_v34 = vmul.f32 %v4641_v57, %v4640_v35  ;;  %1424 = vst.msk [vmem:[%s3525_s24 + $0x8] sm:$0xff] %vm278_vm0, %v1416_v58 }
 0x10a   : > { %v1380_v56 = vadd.f32 %v1379_v24, %v1378_v17  ;;  %v1422_v16 = vmul.f32 %v4643_v2, %v4642_v0  ;;  %1425 = vst.msk [vmem:[%s3525_s24 + $0x10] sm:$0xff] %vm278_vm0, %v1417_v21  ;;  %1426 = vst.msk [vmem:[%s3525_s24 + $0x18] sm:$0xff] %vm278_vm0, %v1418_v59  ;;  %v1431_v10 = vmul.f32 %v4644_v60, %v3826_v5  ;;  %v1409_v13 = vsel %vm278_vm0, %v4645_v45, 0.0 }
 0x10b   : > { %v1393_v12 = vadd.f32 %v1392_v4, %v1391_v19  ;;  %v1406_v24 = vadd.f32 %v1405_v8, %v1404_v48  ;;  %1427 = vst.msk [vmem:[%s3525_s24 + $0x20] sm:$0xff] %vm278_vm0, %v1419_v1  ;;  %1428 = vst.msk [vmem:[%s3525_s24 + $0x28] sm:$0xff] %vm278_vm0, %v1420_v62  ;;  %v1432_v23 = vmul.f32 %v4631_v6, %v3832_v42  ;;  %v1413_v14 = vsel %vm278_vm0, %v4646_v46, 0.0 }
 0x10c   : > { %v1433_v11 = vmul.f32 %v4633_v15, %v1329_v52  ;;  %1429 = vst.msk [vmem:[%s3525_s24 + $0x30] sm:$0xff] %vm278_vm0, %v1421_v34  ;;  %1430 = vst.msk [vmem:[%s3525_s24 + $0x38] sm:$0xff] %vm278_vm0, %v1422_v16  ;;  %v1434_v5 = vmul.f32 %v4635_v39, %v1346_v38  ;;  %v1435_v18 = vmul.f32 %v4637_v40, %v1363_v33  ;;  %v1411_v52 = vsel %vm278_vm0, %v3770_v22, 0.0 }
 0x10d   : > { %v1436_v53 = vmul.f32 %v4639_v26, %v1380_v56  ;;  %1561 = vst.msk [vmem:[%s3525_s24 + $0x40] sm:$0xff] %vm278_vm0, %v1431_v10  ;;  %v1395_v42 = vadd.f32 %v1394_v54, %v1393_v12  ;;  %v1408_v55 = vadd.f32 %v1407_v9, %v1406_v24  ;;  %1562 = vst.msk [vmem:[%s3525_s24 + $0x48] sm:$0xff] %vm278_vm0, %v1432_v23 }
 0x10e   : > { %1563 = vst.msk [vmem:[%s3525_s24 + $0x50] sm:$0xff] %vm278_vm0, %v1433_v11  ;;  %1564 = vst.msk [vmem:[%s3525_s24 + $0x58] sm:$0xff] %vm278_vm0, %v1434_v5 }
 0x10f   : > { %1565 = vst.msk [vmem:[%s3525_s24 + $0x60] sm:$0xff] %vm278_vm0, %v1435_v18  ;;  %1566 = vst.msk [vmem:[%s3525_s24 + $0x68] sm:$0xff] %vm278_vm0, %v1436_v53  ;;  %v1397_v38 = vadd.f32 %v1396_v29, %v1395_v42  ;;  %v1410_v41 = vadd.f32 %v1409_v13, %v1408_v55 }
 0x111   : > { %v1412_v31 = vadd.f32 %v1411_v52, %v1410_v41  ;;  %v1437_v51 = vmul.f32 %v4641_v57, %v1397_v38 }
 0x113   : > { %v1414_v32 = vadd.f32 %v1413_v14, %v1412_v31  ;;  %1567 = vst.msk [vmem:[%s3525_s24 + $0x70] sm:$0xff] %vm278_vm0, %v1437_v51 }
 0x115   : > { %v1438_v50 = vmul.f32 %v4643_v2, %v1414_v32 }
 0x117   : > { %1568 = vst.msk [vmem:[%s3525_s24 + $0x78] sm:$0xff] %vm278_vm0, %v1438_v50 }
 0x118 PF: > { %s12_s11 = sadd.s32 1, %s1783_s11   ;;  %s4647_s9 = smov %s1779_s10 }
 0x119   : > { %p9_p5 = scmp.ge.s32.totalorder %s12_s11, 4   ;;  %s4648_s10 = smov %s4650_s12 }
 0x11b   :  { %11 = sbr.rel (!%p9_p5) target bundleno = 2 (0x2), region = 62 }

</bundles_post_ra>
